<compile_context>
chip_gen: v7x
topology: tpu7x:2x2x1
jax: 0.10.0
libtpu: 0.0.40
codegen_flags: <defaults>
</compile_context>

<pallas_src>
import jax
import jax.numpy as jnp
from jax.experimental import pallas as pl
from jax.experimental.pallas import tpu as pltpu

# ----- sizes implied by the PyTorch module (fc1 in_features = 640 = 64 * 10) -----
C_IN, C1, C2 = 20, 8, 64            # input / conv1 / conv2 channels
K2, PAD1, PAD2 = 5, 1, 2            # conv2 taps, conv1 padding, conv2 padding
L_IN = 40                           # input length
L1_CONV = L_IN + 2 * PAD1           # 42 conv1 output positions
L1_POOL = L1_CONV // 2              # 21 pool1 outputs
L2_CONV = L1_POOL                   # 21 conv2 outputs (k=5, pad=2 -> same length)
L2_PADLEN = L1_POOL + 2 * PAD2      # 25 zero-padded pool1 rows fed to conv2
L2_POOL = L2_CONV // 2              # 10 pool2 outputs (position 20 dropped by floor)
FC1_IN, FC1_OUT, OUT_DIM = C2 * L2_POOL, 16, 1


def seq_emb_kernel(x_ref, w1_ref, b1_ref, w2_ref, b2_ref,
                   wf1_ref, bf1_ref, wf2_ref, bf2_ref, o_ref):
    # x_ref:   (42, 20, T) bf16   time-major, conv1 zero padding applied, batch on lanes
    # w1_ref:  (8, 20)   bf16     conv1 weight (cout, cin)
    # b1_ref:  (8, 1)    f32
    # w2_ref:  (64, 40)  bf16     conv2 im2col weight, column = tap*8 + cin
    # b2_ref:  (64, 1)   f32
    # wf1_ref: (16, 640) bf16     fc1 weight, column = time*64 + chan
    # bf1_ref: (16, 1)   f32
    # wf2_ref: (1, 16)   f32
    # bf2_ref: (1, 1)    f32
    # o_ref:   (1, T)    f32
    t_n = x_ref.shape[-1]

    def bmm(w, x):  # (B, M, K) @ (B, K, N) -> (B, M, N), f32 accumulation on the MXU
        return jax.lax.dot_general(
            w, x, (((2,), (1,)), ((0,), (0,))),
            preferred_element_type=jnp.float32)

    # --- conv1 (kernel size 1): per-time-position (8,20)@(20,T), batched over 42 positions ---
    w1b = jnp.broadcast_to(w1_ref[...][None], (L1_CONV, C1, C_IN))
    h1 = bmm(w1b, x_ref[...])                                   # (42, 8, T) f32, pre-bias

    # --- pool1 over adjacent time pairs, then bias + ReLU (exact reorder: max commutes
    #     with per-channel bias add; ReLU is monotone) ---
    h1 = h1.reshape(L1_POOL, 2, C1, t_n)
    p1 = jnp.maximum(h1[:, 0], h1[:, 1])                        # (21, 8, T)
    p1 = jnp.maximum(p1 + b1_ref[...][None], 0.0)               # (21, 8, T) f32

    # --- conv2: zero-pad the (outer) time axis, im2col by stacking the 5 tap slices along
    #     the channel/sublane axis (exact f32-tile boundaries), one K=40 matmul per position ---
    zpad = jnp.zeros((PAD2, C1, t_n), jnp.float32)
    p1pad = jnp.concatenate([zpad, p1, zpad], axis=0)           # (25, 8, T) f32
    cols = jnp.concatenate(
        [p1pad[k:k + L2_CONV] for k in range(K2)],
        axis=1).astype(jnp.bfloat16)                            # (21, 40, T) bf16
    w2b = jnp.broadcast_to(w2_ref[...][None], (L2_CONV, C2, K2 * C1))
    c2 = bmm(w2b, cols)                                         # (21, 64, T) f32, pre-bias

    # --- pool2 (floor(21/2)=10 pairs, position 20 dropped), then bias + ReLU ---
    c2 = c2[:2 * L2_POOL].reshape(L2_POOL, 2, C2, t_n)
    p2 = jnp.maximum(c2[:, 0], c2[:, 1])                        # (10, 64, T)
    p2 = jnp.maximum(p2 + b2_ref[...][None], 0.0).astype(jnp.bfloat16)

    # --- fc1 as a single 640-contraction: flatten on sublanes only (layout preserving) ---
    flat = p2.reshape(FC1_IN, t_n)                              # (640, T) bf16
    h = jnp.dot(wf1_ref[...], flat, preferred_element_type=jnp.float32)  # (16, T)
    h = jnp.maximum(h + bf1_ref[...], 0.0)

    # Dropout(p=0.5) is identity in eval / inference mode.
    # TODO(synk): training-mode dropout (pltpu.prng_seed / prng_random_bits) not implemented.

    # --- fc2: (1,16)@(16,T) -> lane-dense (1, T) output ---
    o_ref[...] = (jnp.dot(wf2_ref[...], h, preferred_element_type=jnp.float32)
                  + bf2_ref[...])


def init_params(key):
    """Deterministic PyTorch-style uniform(-1/sqrt(fan_in)) init; native PyTorch shapes."""
    ks = jax.random.split(key, 8)

    def u(k, shape, fan_in):
        bound = 1.0 / jnp.sqrt(jnp.float32(fan_in))
        return jax.random.uniform(k, shape, jnp.float32, -bound, bound)

    wc1 = u(ks[0], (C1, C_IN, 1), C_IN * 1)        # conv1.weight (8, 20, 1)
    bc1 = u(ks[1], (C1,), C_IN * 1)                # conv1.bias   (8,)
    wc2 = u(ks[2], (C2, C1, K2), C1 * K2)          # conv2.weight (64, 8, 5)
    bc2 = u(ks[3], (C2,), C1 * K2)                 # conv2.bias   (64,)
    w1 = u(ks[4], (FC1_OUT, FC1_IN), FC1_IN)       # fc1.weight   (16, 640)
    b1 = u(ks[5], (FC1_OUT,), FC1_IN)              # fc1.bias     (16,)
    w2 = u(ks[6], (OUT_DIM, FC1_OUT), FC1_OUT)     # fc2.weight   (1, 16)
    b2 = u(ks[7], (OUT_DIM,), FC1_OUT)             # fc2.bias     (1,)
    return wc1, bc1, wc2, bc2, w1, b1, w2, b2


def pack_params(params):
    """Rearrange PyTorch-shaped params into the kernel's batch-on-lanes layouts."""
    wc1, bc1, wc2, bc2, w1, b1, w2, b2 = params
    w1k = wc1[:, :, 0].astype(jnp.bfloat16)                             # (8, 20)
    b1k = bc1.reshape(C1, 1)
    # im2col column index is tap-major (tap*8 + cin): permute (64, 8, 5) -> (64, 5, 8).
    w2k = jnp.transpose(wc2, (0, 2, 1)).reshape(C2, K2 * C1).astype(jnp.bfloat16)
    b2k = bc2.reshape(C2, 1)
    # Kernel flattens p2 (10, 64, T) time-major (t*64 + c); PyTorch flattens (N, 64, 10)
    # channel-major (c*10 + t) -> permute fc1 columns accordingly.
    wf1 = jnp.transpose(w1.reshape(FC1_OUT, C2, L2_POOL),
                        (0, 2, 1)).reshape(FC1_OUT, FC1_IN).astype(jnp.bfloat16)
    bf1 = b1.reshape(FC1_OUT, 1)
    wf2 = w2                                                            # (1, 16) f32
    bf2 = b2.reshape(OUT_DIM, 1)
    return w1k, b1k, w2k, b2k, wf1, bf1, wf2, bf2


def _round_up(x, m):
    return (x + m - 1) // m * m


def seq_emb_32x1_16_forward(x_ncl, packed, *, block_n=512):
    """x_ncl: (N, 20, 40) float32 (PyTorch NCL). Returns (N, 1) float32."""
    n = x_ncl.shape[0]

    # Batch tile lives on the lane axis -> pad batch to a multiple of 128; force >=2 grid
    # steps when the batch allows so ("parallel",) can shard across v7x's two TensorCores.
    n_pad = _round_up(n, 128)
    tile_n = min(block_n, n_pad)
    if n_pad // tile_n < 2 and n_pad >= 2 * 128:
        tile_n = _round_up(n_pad // 2, 128)
    n_pad = _round_up(n_pad, tile_n)

    # Minimal pre-pass (single fused transpose+pad+cast): NCL -> time-major batch-on-lanes
    # (L, C, N), conv1 zero padding on the outer time axis, batch pad, bf16 cast.
    # TODO(synk): consume x in its native (N, 20, 40) layout (kernel-side leading<->lane
    # transpose) to remove this extra HBM round trip entirely.
    xt = jnp.transpose(x_ncl, (2, 1, 0)).astype(jnp.bfloat16)           # (40, 20, N)
    xt = jnp.pad(xt, ((PAD1, PAD1), (0, 0), (0, n_pad - n)))            # (42, 20, n_pad)

    out = pl.pallas_call(
        seq_emb_kernel,
        out_shape=jax.ShapeDtypeStruct((1, n_pad), jnp.float32),
        grid=(n_pad // tile_n,),
        in_specs=[
            pl.BlockSpec((L1_CONV, C_IN, tile_n), lambda i: (0, 0, i)),   # x tile
            pl.BlockSpec((C1, C_IN), lambda i: (0, 0)),                   # conv1 w
            pl.BlockSpec((C1, 1), lambda i: (0, 0)),                      # conv1 b
            pl.BlockSpec((C2, K2 * C1), lambda i: (0, 0)),                # conv2 w (im2col)
            pl.BlockSpec((C2, 1), lambda i: (0, 0)),                      # conv2 b
            pl.BlockSpec((FC1_OUT, FC1_IN), lambda i: (0, 0)),            # fc1 w
            pl.BlockSpec((FC1_OUT, 1), lambda i: (0, 0)),                 # fc1 b
            pl.BlockSpec((OUT_DIM, FC1_OUT), lambda i: (0, 0)),           # fc2 w
            pl.BlockSpec((OUT_DIM, 1), lambda i: (0, 0)),                 # fc2 b
        ],
        out_specs=pl.BlockSpec((1, tile_n), lambda i: (0, i)),            # lane-dense output
        compiler_params=pltpu.CompilerParams(
            dimension_semantics=("parallel",),
            vmem_limit_bytes=32 * 1024 * 1024),
    )(xt, *packed)
    return out[0, :n].reshape(n, OUT_DIM)


def reference_forward(x_ncl, params):
    """Pure-JAX f32 reference mirroring the PyTorch forward (eval mode)."""
    wc1, bc1, wc2, bc2, w1, b1, w2, b2 = params
    n = x_ncl.shape[0]
    y = jax.lax.conv_general_dilated(x_ncl, wc1, (1,), [(PAD1, PAD1)],
                                     dimension_numbers=("NCH", "OIH", "NCH"))
    y = jax.nn.relu(y + bc1[None, :, None])                              # (N, 8, 42)
    y = jnp.max(y[:, :, :(y.shape[2] // 2) * 2].reshape(n, C1, -1, 2), axis=-1)   # (N, 8, 21)
    z = jax.lax.conv_general_dilated(y, wc2, (1,), [(PAD2, PAD2)],
                                     dimension_numbers=("NCH", "OIH", "NCH"))
    z = jax.nn.relu(z + bc2[None, :, None])                              # (N, 64, 21)
    z = jnp.max(z[:, :, :(z.shape[2] // 2) * 2].reshape(n, C2, -1, 2), axis=-1)   # (N, 64, 10)
    flat = z.reshape(n, FC1_IN)                                          # channel-major flatten
    h = jax.nn.relu(flat @ w1.T + b1)
    return h @ w2.T + b2                                                 # (N, 1)


if __name__ == "__main__":
    key = jax.random.PRNGKey(0)
    pkey, xkey = jax.random.split(key)

    params = init_params(pkey)
    packed = pack_params(params)

    x = jax.random.normal(xkey, (2, C_IN, L_IN), jnp.float32)            # (2, 20, 40)

    out = seq_emb_32x1_16_forward(x, packed)
    jax.block_until_ready(out)

    ref = reference_forward(x, params)
    assert out.shape == (2, OUT_DIM)
    # bf16 matmul operands vs f32 reference -> loosened tolerance.
    assert jnp.allclose(out, ref, rtol=5e-2, atol=3e-2), (out, ref)

    print("KERNEL_OK")
</pallas_src>

<mosaic_0001>
module attributes {stable_mosaic.version = 11 : i64} {
  func.func @seq_emb_kernel(%arg0: i32, %arg1: memref<42x20x128xbf16, #tpu.memory_space<vmem>>, %arg2: memref<8x20xbf16, #tpu.memory_space<vmem>>, %arg3: memref<8x1xf32, #tpu.memory_space<vmem>>, %arg4: memref<64x40xbf16, #tpu.memory_space<vmem>>, %arg5: memref<64x1xf32, #tpu.memory_space<vmem>>, %arg6: memref<16x640xbf16, #tpu.memory_space<vmem>>, %arg7: memref<16x1xf32, #tpu.memory_space<vmem>>, %arg8: memref<1x16xf32, #tpu.memory_space<vmem>>, %arg9: memref<1x1xf32, #tpu.memory_space<vmem>>, %arg10: memref<1x128xf32, #tpu.memory_space<vmem>>) attributes {dimension_semantics = [#tpu.dimension_semantics<parallel>], iteration_bounds = array<i64: 1>, scalar_prefetch = 0 : i64, scratch_operands = 0 : i64, tpu.core_type = #tpu.core_type<tc>, window_params = [{transform_indices = @transform_0, window_bounds = array<i64: 42, 20, 128>}, {pipeline_mode = #tpu.pipeline_mode<synchronous>, transform_indices = @transform_1, window_bounds = array<i64: 8, 20>}, {pipeline_mode = #tpu.pipeline_mode<synchronous>, transform_indices = @transform_2, window_bounds = array<i64: 8, 1>}, {pipeline_mode = #tpu.pipeline_mode<synchronous>, transform_indices = @transform_3, window_bounds = array<i64: 64, 40>}, {pipeline_mode = #tpu.pipeline_mode<synchronous>, transform_indices = @transform_4, window_bounds = array<i64: 64, 1>}, {pipeline_mode = #tpu.pipeline_mode<synchronous>, transform_indices = @transform_5, window_bounds = array<i64: 16, 640>}, {pipeline_mode = #tpu.pipeline_mode<synchronous>, transform_indices = @transform_6, window_bounds = array<i64: 16, 1>}, {pipeline_mode = #tpu.pipeline_mode<synchronous>, transform_indices = @transform_7, window_bounds = array<i64: 1, 16>}, {pipeline_mode = #tpu.pipeline_mode<synchronous>, transform_indices = @transform_8, window_bounds = array<i64: 1, 1>}, {transform_indices = @transform_9, window_bounds = array<i64: 1, 128>}]} {
    %c0 = arith.constant 0 : index
    %c0_0 = arith.constant 0 : index
    %0 = vector.load %arg2[%c0, %c0_0] : memref<8x20xbf16, #tpu.memory_space<vmem>>, vector<8x20xbf16>
    %1 = vector.shape_cast %0 : vector<8x20xbf16> to vector<1x8x20xbf16>
    %2 = vector.shape_cast %1 : vector<1x8x20xbf16> to vector<1x8x20xbf16>
    %3 = vector.broadcast %2 : vector<1x8x20xbf16> to vector<42x8x20xbf16>
    %c0_1 = arith.constant 0 : index
    %c0_2 = arith.constant 0 : index
    %c0_3 = arith.constant 0 : index
    %4 = vector.load %arg1[%c0_1, %c0_2, %c0_3] : memref<42x20x128xbf16, #tpu.memory_space<vmem>>, vector<42x20x128xbf16>
    %cst = arith.constant dense<0.000000e+00> : vector<42x8x128xf32>
    %5 = tpu.matmul %3, %4, %cst {dimension_numbers = #tpu.dot_dimension_numbers<[2], [1], [1], [2], [0, 0, 0, 1, 1, 2], [0], [0]>} : vector<42x8x20xbf16>, vector<42x20x128xbf16>, vector<42x8x128xf32> -> vector<42x8x128xf32>
    %6 = vector.shape_cast %5 : vector<42x8x128xf32> to vector<21x2x8x128xf32>
    %7 = vector.extract_strided_slice %6 {offsets = [0, 0, 0, 0], sizes = [21, 1, 8, 128], strides = [1, 1, 1, 1]} : vector<21x2x8x128xf32> to vector<21x1x8x128xf32>
    %8 = vector.shape_cast %7 : vector<21x1x8x128xf32> to vector<21x8x128xf32>
    %9 = vector.extract_strided_slice %6 {offsets = [0, 1, 0, 0], sizes = [21, 1, 8, 128], strides = [1, 1, 1, 1]} : vector<21x2x8x128xf32> to vector<21x1x8x128xf32>
    %10 = vector.shape_cast %9 : vector<21x1x8x128xf32> to vector<21x8x128xf32>
    %11 = arith.maximumf %8, %10 : vector<21x8x128xf32>
    %c0_4 = arith.constant 0 : index
    %c0_5 = arith.constant 0 : index
    %12 = vector.load %arg3[%c0_4, %c0_5] : memref<8x1xf32, #tpu.memory_space<vmem>>, vector<8x1xf32>
    %13 = vector.shape_cast %12 : vector<8x1xf32> to vector<1x8x1xf32>
    %14 = vector.broadcast %13 : vector<1x8x1xf32> to vector<21x8x128xf32>
    %15 = arith.addf %11, %14 : vector<21x8x128xf32>
    %cst_6 = arith.constant 0.000000e+00 : f32
    %16 = vector.broadcast %cst_6 : f32 to vector<21x8x128xf32>
    %17 = arith.maximumf %15, %16 : vector<21x8x128xf32>
    %cst_7 = arith.constant 0.000000e+00 : f32
    %18 = vector.broadcast %cst_7 : f32 to vector<2x8x128xf32>
    %19 = tpu.concatenate %18, %17, %18 in 0 : vector<2x8x128xf32>, vector<21x8x128xf32>, vector<2x8x128xf32> -> vector<25x8x128xf32>
    %20 = vector.extract_strided_slice %19 {offsets = [0, 0, 0], sizes = [21, 8, 128], strides = [1, 1, 1]} : vector<25x8x128xf32> to vector<21x8x128xf32>
    %21 = vector.extract_strided_slice %19 {offsets = [1, 0, 0], sizes = [21, 8, 128], strides = [1, 1, 1]} : vector<25x8x128xf32> to vector<21x8x128xf32>
    %22 = vector.extract_strided_slice %19 {offsets = [2, 0, 0], sizes = [21, 8, 128], strides = [1, 1, 1]} : vector<25x8x128xf32> to vector<21x8x128xf32>
    %23 = vector.extract_strided_slice %19 {offsets = [3, 0, 0], sizes = [21, 8, 128], strides = [1, 1, 1]} : vector<25x8x128xf32> to vector<21x8x128xf32>
    %24 = vector.extract_strided_slice %19 {offsets = [4, 0, 0], sizes = [21, 8, 128], strides = [1, 1, 1]} : vector<25x8x128xf32> to vector<21x8x128xf32>
    %25 = tpu.concatenate %20, %21, %22, %23, %24 in 1 : vector<21x8x128xf32>, vector<21x8x128xf32>, vector<21x8x128xf32>, vector<21x8x128xf32>, vector<21x8x128xf32> -> vector<21x40x128xf32>
    %26 = arith.truncf %25 : vector<21x40x128xf32> to vector<21x40x128xbf16>
    %c0_8 = arith.constant 0 : index
    %c0_9 = arith.constant 0 : index
    %27 = vector.load %arg4[%c0_8, %c0_9] : memref<64x40xbf16, #tpu.memory_space<vmem>>, vector<64x40xbf16>
    %28 = vector.shape_cast %27 : vector<64x40xbf16> to vector<1x64x40xbf16>
    %29 = vector.shape_cast %28 : vector<1x64x40xbf16> to vector<1x64x40xbf16>
    %30 = vector.broadcast %29 : vector<1x64x40xbf16> to vector<21x64x40xbf16>
    %cst_10 = arith.constant dense<0.000000e+00> : vector<21x64x128xf32>
    %31 = tpu.matmul %30, %26, %cst_10 {dimension_numbers = #tpu.dot_dimension_numbers<[2], [1], [1], [2], [0, 0, 0, 1, 1, 2], [0], [0]>} : vector<21x64x40xbf16>, vector<21x40x128xbf16>, vector<21x64x128xf32> -> vector<21x64x128xf32>
    %32 = vector.extract_strided_slice %31 {offsets = [0, 0, 0], sizes = [20, 64, 128], strides = [1, 1, 1]} : vector<21x64x128xf32> to vector<20x64x128xf32>
    %33 = vector.shape_cast %32 : vector<20x64x128xf32> to vector<10x2x64x128xf32>
    %34 = vector.extract_strided_slice %33 {offsets = [0, 0, 0, 0], sizes = [10, 1, 64, 128], strides = [1, 1, 1, 1]} : vector<10x2x64x128xf32> to vector<10x1x64x128xf32>
    %35 = vector.shape_cast %34 : vector<10x1x64x128xf32> to vector<10x64x128xf32>
    %36 = vector.extract_strided_slice %33 {offsets = [0, 1, 0, 0], sizes = [10, 1, 64, 128], strides = [1, 1, 1, 1]} : vector<10x2x64x128xf32> to vector<10x1x64x128xf32>
    %37 = vector.shape_cast %36 : vector<10x1x64x128xf32> to vector<10x64x128xf32>
    %38 = arith.maximumf %35, %37 : vector<10x64x128xf32>
    %c0_11 = arith.constant 0 : index
    %c0_12 = arith.constant 0 : index
    %39 = vector.load %arg5[%c0_11, %c0_12] : memref<64x1xf32, #tpu.memory_space<vmem>>, vector<64x1xf32>
    %40 = vector.shape_cast %39 : vector<64x1xf32> to vector<1x64x1xf32>
    %41 = vector.broadcast %40 : vector<1x64x1xf32> to vector<10x64x128xf32>
    %42 = arith.addf %38, %41 : vector<10x64x128xf32>
    %cst_13 = arith.constant 0.000000e+00 : f32
    %43 = vector.broadcast %cst_13 : f32 to vector<10x64x128xf32>
    %44 = arith.maximumf %42, %43 : vector<10x64x128xf32>
    %45 = arith.truncf %44 : vector<10x64x128xf32> to vector<10x64x128xbf16>
    %46 = vector.shape_cast %45 : vector<10x64x128xbf16> to vector<640x128xbf16>
    %c0_14 = arith.constant 0 : index
    %c0_15 = arith.constant 0 : index
    %47 = vector.load %arg6[%c0_14, %c0_15] : memref<16x640xbf16, #tpu.memory_space<vmem>>, vector<16x640xbf16>
    %cst_16 = arith.constant dense<0.000000e+00> : vector<16x128xf32>
    %48 = tpu.matmul %47, %46, %cst_16 {dimension_numbers = #tpu.dot_dimension_numbers<[1], [0], [0], [1], [0, 0, 1, 1], [], []>} : vector<16x640xbf16>, vector<640x128xbf16>, vector<16x128xf32> -> vector<16x128xf32>
    %c0_17 = arith.constant 0 : index
    %c0_18 = arith.constant 0 : index
    %49 = vector.load %arg7[%c0_17, %c0_18] : memref<16x1xf32, #tpu.memory_space<vmem>>, vector<16x1xf32>
    %50 = vector.broadcast %49 : vector<16x1xf32> to vector<16x128xf32>
    %51 = arith.addf %48, %50 : vector<16x128xf32>
    %cst_19 = arith.constant 0.000000e+00 : f32
    %52 = vector.broadcast %cst_19 : f32 to vector<16x128xf32>
    %53 = arith.maximumf %51, %52 : vector<16x128xf32>
    %c0_20 = arith.constant 0 : index
    %c0_21 = arith.constant 0 : index
    %54 = vector.load %arg8[%c0_20, %c0_21] : memref<1x16xf32, #tpu.memory_space<vmem>>, vector<1x16xf32>
    %cst_22 = arith.constant dense<0.000000e+00> : vector<1x128xf32>
    %55 = tpu.matmul %54, %53, %cst_22 {dimension_numbers = #tpu.dot_dimension_numbers<[1], [0], [0], [1], [0, 0, 1, 1], [], []>} : vector<1x16xf32>, vector<16x128xf32>, vector<1x128xf32> -> vector<1x128xf32>
    %c0_23 = arith.constant 0 : index
    %c0_24 = arith.constant 0 : index
    %56 = vector.load %arg9[%c0_23, %c0_24] : memref<1x1xf32, #tpu.memory_space<vmem>>, vector<1x1xf32>
    %57 = vector.broadcast %56 : vector<1x1xf32> to vector<1x128xf32>
    %58 = arith.addf %55, %57 : vector<1x128xf32>
    %c0_25 = arith.constant 0 : index
    %c0_26 = arith.constant 0 : index
    %59 = vector.load %arg10[%c0_25, %c0_26] : memref<1x128xf32, #tpu.memory_space<vmem>>, vector<1x128xf32>
    tpu.vector_store %arg10[%c0_25, %c0_26], %58 {strides = array<i32>} : memref<1x128xf32, #tpu.memory_space<vmem>>, vector<1x128xf32>,
    return
  }
  func.func @transform_0(%arg0: i32) -> (i32, i32, i32) {
    %c0_i32 = arith.constant 0 : i32
    %c0_i32_0 = arith.constant 0 : i32
    %c0_i32_1 = arith.constant 0 : i32
    return %c0_i32, %c0_i32_0, %arg0 : i32, i32, i32
  }
  func.func @transform_1(%arg0: i32) -> (i32, i32) {
    %c0_i32 = arith.constant 0 : i32
    %c0_i32_0 = arith.constant 0 : i32
    %c0_i32_1 = arith.constant 0 : i32
    return %c0_i32, %c0_i32_0 : i32, i32
  }
  func.func @transform_2(%arg0: i32) -> (i32, i32) {
    %c0_i32 = arith.constant 0 : i32
    %c0_i32_0 = arith.constant 0 : i32
    %c0_i32_1 = arith.constant 0 : i32
    return %c0_i32, %c0_i32_0 : i32, i32
  }
  func.func @transform_3(%arg0: i32) -> (i32, i32) {
    %c0_i32 = arith.constant 0 : i32
    %c0_i32_0 = arith.constant 0 : i32
    %c0_i32_1 = arith.constant 0 : i32
    return %c0_i32, %c0_i32_0 : i32, i32
  }
  func.func @transform_4(%arg0: i32) -> (i32, i32) {
    %c0_i32 = arith.constant 0 : i32
    %c0_i32_0 = arith.constant 0 : i32
    %c0_i32_1 = arith.constant 0 : i32
    return %c0_i32, %c0_i32_0 : i32, i32
  }
  func.func @transform_5(%arg0: i32) -> (i32, i32) {
    %c0_i32 = arith.constant 0 : i32
    %c0_i32_0 = arith.constant 0 : i32
    %c0_i32_1 = arith.constant 0 : i32
    return %c0_i32, %c0_i32_0 : i32, i32
  }
  func.func @transform_6(%arg0: i32) -> (i32, i32) {
    %c0_i32 = arith.constant 0 : i32
    %c0_i32_0 = arith.constant 0 : i32
    %c0_i32_1 = arith.constant 0 : i32
    return %c0_i32, %c0_i32_0 : i32, i32
  }
  func.func @transform_7(%arg0: i32) -> (i32, i32) {
    %c0_i32 = arith.constant 0 : i32
    %c0_i32_0 = arith.constant 0 : i32
    %c0_i32_1 = arith.constant 0 : i32
    return %c0_i32, %c0_i32_0 : i32, i32
  }
  func.func @transform_8(%arg0: i32) -> (i32, i32) {
    %c0_i32 = arith.constant 0 : i32
    %c0_i32_0 = arith.constant 0 : i32
    %c0_i32_1 = arith.constant 0 : i32
    return %c0_i32, %c0_i32_0 : i32, i32
  }
  func.func @transform_9(%arg0: i32) -> (i32, i32) {
    %c0_i32 = arith.constant 0 : i32
    %c0_i32_0 = arith.constant 0 : i32
    return %c0_i32, %arg0 : i32, i32
  }
}

</mosaic_0001>

<bundles_post_ra>
// kernel: tpu_custom_call.1
= control target key start
LH: loop header
LB: loop body
LE: loop exit
PB: predicated region body
PF: predicated region fallthrough
CT: control target
= control target key end

     0   :  { %s6943_s0 = inlined_call_operand.vmem [shape: bf16[42,20,128], index: 0, kind: input, shape index: {}]   ;;  %s6944_s1 = inlined_call_operand.vmem [shape: bf16[8,20], index: 1, kind: input, shape index: {}]   ;;  %s6945_s2 = inlined_call_operand.vmem [shape: f32[8,1], index: 2, kind: input, shape index: {}]   ;;  %s6946_s3 = inlined_call_operand.vmem [shape: bf16[64,40], index: 3, kind: input, shape index: {}]   ;;  %s6947_s4 = inlined_call_operand.vmem [shape: f32[64,1], index: 4, kind: input, shape index: {}]   ;;  %s6948_s5 = inlined_call_operand.vmem [shape: bf16[16,640], index: 5, kind: input, shape index: {}]   ;;  %s6949_s6 = inlined_call_operand.vmem [shape: f32[16,1], index: 6, kind: input, shape index: {}]   ;;  %s6950_s7 = inlined_call_operand.vmem [shape: f32[1,16], index: 7, kind: input, shape index: {}]   ;;  %s6951_s8 = inlined_call_operand.<no memory space> [shape: f32[1,1], index: 8, kind: input, shape index: {}]   ;;  %s6952_s9 = inlined_call_operand.hbm [shape: f32[1,128], index: 9, kind: output, shape index: {}]  }
   0x1   :  { %v14_v0 = vstv %s6951_s8 }
   0x2   :  { %15 = vst [vmem:[#allocation2] sm:$0x1] %v14_v0 }
   0x3   :  { %v5668_v1 = vld [vmem:[%s6943_s0] sm:$0xff]   ;;  %v5788_v2 = vmov 0.0   ;;  %v5669_v3 = vld [vmem:[%s6943_s0 + $0xc] sm:$0xff]   ;;  %vm176_vm0 = vcmask 1041408   ;;  %vm172_vm1 = vcmask 162816   ;;  %vm5789_vm2 = vmmov 0  }
   0x4   :  { %4998 = vmatprep.subr.bf16.mxu0 %v5788_v2  ;;  %5006 = vmatprep.subr.bf16.mxu1 %v5788_v2  ;;  %v5670_v4 = vld [vmem:[%s6943_s0 + $0x8] ss:$0 sps:$4 sm:$0x33]   ;;  %v5671_v5 = vld [vmem:[%s6943_s0 + $0x14] ss:$0 sps:$4 sm:$0x33]  }
   0x5   :  { %4999 = vmatpush3.bf16.msra.mxu0 %v5668_v1  ;;  %5007 = vmatpush3.bf16.msra.mxu1 %v5669_v3  ;;  %v178_v6 = vsel %vm176_vm0, %v5670_v4, 0  ;;  %v5868_v7 = vld [vmem:[%s6944_s1] sm:$0xf]  ;;  %v5672_v8 = vld [vmem:[%s6943_s0 + $0x18] sm:$0xff]   ;;  %v230_v9 = vsel %vm176_vm0, %v5671_v5, 0  ;;  %v5673_v10 = vld [vmem:[%s6943_s0 + $0x24] sm:$0xff]  }
   0x6   :  { %5000 = vmatprep.subr.bf16.mxu0 %v5788_v2  ;;  %5008 = vmatprep.subr.bf16.mxu1 %v5788_v2  ;;  %v5674_v11 = vld [vmem:[%s6943_s0 + $0x20] ss:$0 sps:$4 sm:$0x33]   ;;  %v5675_v12 = vld [vmem:[%s6943_s0 + $0x2c] ss:$0 sps:$4 sm:$0x33]  }
   0x7   :  { %5002 = vmatprep.mubr.msk.bf16.mxu0 %vm5789_vm2, %v5788_v2  ;;  %5010 = vmatprep.mubr.msk.bf16.mxu1 %vm5789_vm2, %v5788_v2  ;;  %v5790_v13 = vmov 0   ;;  %v282_v14 = vsel %vm176_vm0, %v5674_v11, 0  ;;  %v334_v15 = vsel %vm176_vm0, %v5675_v12, 0  ;;  %v5676_v16 = vld [vmem:[%s6943_s0 + $0x30] sm:$0xff]   ;;  %v5677_v18 = vld [vmem:[%s6943_s0 + $0x3c] sm:$0xff]   ;;  %v5680_v22 = vld [vmem:[%s6943_s0 + $0x48] sm:$0xff]  }
   0x8   :  { %5666 = vset.pattern.permute.xlu0 %v5790_v13  ;;  %5667 = vset.pattern.permute.xlu1 %v5790_v13  ;;  %v5678_v17 = vld [vmem:[%s6943_s0 + $0x38] ss:$0 sps:$4 sm:$0x33]   ;;  %v5679_v19 = vld [vmem:[%s6943_s0 + $0x44] ss:$0 sps:$4 sm:$0x33]  }
   0x9   :  { %5001 = vmatpush3.bf16.msra.mxu0 %v178_v6  ;;  %5009 = vmatpush3.bf16.msra.mxu1 %v230_v9  ;;  %v386_v20 = vsel %vm176_vm0, %v5678_v17, 0  ;;  %v438_v21 = vsel %vm176_vm0, %v5679_v19, 0  ;;  %v5682_v23 = vld [vmem:[%s6943_s0 + $0x50] ss:$0 sps:$4 sm:$0x33]   ;;  %v5681_v24 = vld [vmem:[%s6943_s0 + $0x54] sm:$0xff]  }
   0xa   :  { %5014 = vmatprep.subr.bf16.mxu0 %v5788_v2  ;;  %5022 = vmatprep.subr.bf16.mxu1 %v5788_v2  ;;  %v5683_v25 = vld [vmem:[%s6943_s0 + $0x5c] ss:$0 sps:$4 sm:$0x33]   ;;  %v490_v26 = vsel %vm176_vm0, %v5682_v23, 0  ;;  %v2373_v27 = vld [vmem:[%s6945_s2] sm:$0xff]  ;;  %v5685_v32 = vld [vmem:[%s6943_s0 + $0x6c] sm:$0xff]  }
   0xb   :  { %v542_v28 = vsel %vm176_vm0, %v5683_v25, 0  ;;  %v5684_v29 = vld [vmem:[%s6943_s0 + $0x60] sm:$0xff]   ;;  %2376 = vperm.xlu0 %5666, %v2373_v27   ;;  %v5686_v30 = vld [vmem:[%s6943_s0 + $0x68] ss:$0 sps:$4 sm:$0x33]   ;;  %v3947_v34 = vld [vmem:[%s6947_s4 + $0x18] sm:$0xff] }
   0xc   :  { %5003 = vmatmul.mubr.msk.bf16.vlgmr.msra.gmra.mrb[0].mxu0 %vm172_vm1, %v5868_v7  ;;  %5011 = vmatmul.mubr.msk.bf16.vlgmr.msra.gmra.mrb[0].mxu1 %vm172_vm1, %v5868_v7  ;;  %v3944_v31 = vld [vmem:[%s6947_s4] sm:$0xff]  ;;  %v5687_v33 = vld [vmem:[%s6943_s0 + $0x74] ss:$0 sps:$4 sm:$0x33]   ;;  %v594_v35 = vsel %vm176_vm0, %v5686_v30, 0  ;;  %v5688_v37 = vld [vmem:[%s6943_s0 + $0x78] sm:$0xff]  }
   0xd   :  { %5015 = vmatpush3.bf16.msra.mxu0 %v5672_v8  ;;  %5023 = vmatpush3.bf16.msra.mxu1 %v5673_v10  ;;  %v646_v36 = vsel %vm176_vm0, %v5687_v33, 0  ;;  %v5690_v38 = vld [vmem:[%s6943_s0 + $0x80] ss:$0 sps:$4 sm:$0x33]   ;;  %v3949_v39 = vld [vmem:[%s6947_s4 + $0x28] sm:$0xff]  ;;  %v3951_v42 = vld [vmem:[%s6947_s4 + $0x38] sm:$0xff] }
   0xe   :  { %5016 = vmatprep.subr.bf16.mxu0 %v5788_v2  ;;  %5024 = vmatprep.subr.bf16.mxu1 %v5788_v2  ;;  %v5689_v40 = vld [vmem:[%s6943_s0 + $0x84] sm:$0xff]   ;;  %v5691_v41 = vld [vmem:[%s6943_s0 + $0x8c] ss:$0 sps:$4 sm:$0x33]   ;;  %v698_v43 = vsel %vm176_vm0, %v5690_v38, 0  ;;  %v5692_v45 = vld [vmem:[%s6943_s0 + $0x90] sm:$0xff]  }
   0xf   :  { %5018 = vmatprep.mubr.msk.bf16.mxu0 %vm5789_vm2, %v5788_v2  ;;  %5026 = vmatprep.mubr.msk.bf16.mxu1 %vm5789_vm2, %v5788_v2  ;;  %v750_v44 = vsel %vm176_vm0, %v5691_v41, 0  ;;  %v5694_v46 = vld [vmem:[%s6943_s0 + $0x98] ss:$0 sps:$4 sm:$0x33]   ;;  %v4199_v47 = vld [vmem:[%s6949_s6 + $0x8] sm:$0xff]  ;;  %v5693_v48 = vld [vmem:[%s6943_s0 + $0x9c] sm:$0xff]  }
  0x10   :  { %3954 = vperm.xlu0 %5666, %v3944_v31   ;;  %v5695_v49 = vld [vmem:[%s6943_s0 + $0xa4] ss:$0 sps:$4 sm:$0x33]   ;;  %v802_v50 = vsel %vm176_vm0, %v5694_v46, 0  ;;  %v5696_v52 = vld [vmem:[%s6943_s0 + $0xa8] sm:$0xff]   ;;  %v5697_v53 = vld [vmem:[%s6943_s0 + $0xb4] sm:$0xff]  }
  0x11   :  { %5017 = vmatpush3.bf16.msra.mxu0 %v282_v14  ;;  %5025 = vmatpush3.bf16.msra.mxu1 %v334_v15  ;;  %v854_v51 = vsel %vm176_vm0, %v5695_v49, 0  ;;  %v5698_v54 = vld [vmem:[%s6943_s0 + $0xb0] ss:$0 sps:$4 sm:$0x33]   ;;  %v5700_v58 = vld [vmem:[%s6943_s0 + $0xc0] sm:$0xff]   ;;  %v5704_v0 = vld [vmem:[%s6943_s0 + $0xd8] sm:$0xff]  }
  0x12   :  { %5030 = vmatprep.subr.bf16.mxu0 %v5788_v2  ;;  %5038 = vmatprep.subr.bf16.mxu1 %v5788_v2  ;;  %v5699_v55 = vld [vmem:[%s6943_s0 + $0xbc] ss:$0 sps:$4 sm:$0x33]   ;;  %v906_v56 = vsel %vm176_vm0, %v5698_v54, 0  ;;  %v5701_v60 = vld [vmem:[%s6943_s0 + $0xcc] sm:$0xff]   ;;  %v5705_v3 = vld [vmem:[%s6943_s0 + $0xe4] sm:$0xff]  }
  0x13   :  { %v958_v57 = vsel %vm176_vm0, %v5699_v55, 0  ;;  %v5702_v59 = vld [vmem:[%s6943_s0 + $0xc8] ss:$0 sps:$4 sm:$0x33]   ;;  %v5708_v8 = vld [vmem:[%s6943_s0 + $0xf0] sm:$0xff]   ;;  %v5709_v10 = vld [vmem:[%s6943_s0 + $0xfc] sm:$0xff]  }
  0x14   :  { %5019 = vmatmul.mubr.msk.bf16.vlgmr.msra.gmra.mrb[4].mxu0 %vm172_vm1, %v5868_v7  ;;  %5027 = vmatmul.mubr.msk.bf16.vlgmr.msra.gmra.mrb[4].mxu1 %vm172_vm1, %v5868_v7  ;;  %v5703_v61 = vld [vmem:[%s6943_s0 + $0xd4] ss:$0 sps:$4 sm:$0x33]   ;;  %v1010_v62 = vsel %vm176_vm0, %v5702_v59, 0  ;;  %v5712_v14 = vld [vmem:[%s6943_s0 + $0x108] sm:$0xff]  }
  0x15   :  { %5031 = vmatpush3.bf16.msra.mxu0 %v5676_v16  ;;  %5039 = vmatpush3.bf16.msra.mxu1 %v5677_v18  ;;  %v1062_v63 = vsel %vm176_vm0, %v5703_v61, 0  ;;  %v5706_v1 = vld [vmem:[%s6943_s0 + $0xe0] ss:$0 sps:$4 sm:$0x33]   ;;  %v5713_v15 = vld [vmem:[%s6943_s0 + $0x114] sm:$0xff]  }
  0x16   :  { %5032 = vmatprep.subr.bf16.mxu0 %v5788_v2  ;;  %5040 = vmatprep.subr.bf16.mxu1 %v5788_v2  ;;  %v5707_v4 = vld [vmem:[%s6943_s0 + $0xec] ss:$0 sps:$4 sm:$0x33]   ;;  %v1114_v5 = vsel %vm176_vm0, %v5706_v1, 0 }
  0x17   :  { %5034 = vmatprep.mubr.msk.bf16.mxu0 %vm5789_vm2, %v5788_v2  ;;  %5042 = vmatprep.mubr.msk.bf16.mxu1 %vm5789_vm2, %v5788_v2  ;;  %v1166_v6 = vsel %vm176_vm0, %v5707_v4, 0  ;;  %v5710_v9 = vld [vmem:[%s6943_s0 + $0xf8] ss:$0 sps:$4 sm:$0x33]  }
  0x18   :  { %3969 = vperm.xlu0 %5666, %v3947_v34   ;;  %v5711_v11 = vld [vmem:[%s6943_s0 + $0x104] ss:$0 sps:$4 sm:$0x33]   ;;  %v1218_v12 = vsel %vm176_vm0, %v5710_v9, 0 }
  0x19   :  { %5033 = vmatpush3.bf16.msra.mxu0 %v386_v20  ;;  %5041 = vmatpush3.bf16.msra.mxu1 %v438_v21  ;;  %v1270_v13 = vsel %vm176_vm0, %v5711_v11, 0  ;;  %v5714_v16 = vld [vmem:[%s6943_s0 + $0x110] ss:$0 sps:$4 sm:$0x33]  }
  0x1a   :  { %5046 = vmatprep.subr.bf16.mxu0 %v5788_v2  ;;  %5054 = vmatprep.subr.bf16.mxu1 %v5788_v2  ;;  %v5715_v17 = vld [vmem:[%s6943_s0 + $0x11c] ss:$0 sps:$4 sm:$0x33]  }
  0x1c   :  { %5035 = vmatmul.mubr.msk.bf16.vlgmr.msra.gmra.mrb[8].mxu0 %vm172_vm1, %v5868_v7  ;;  %5043 = vmatmul.mubr.msk.bf16.vlgmr.msra.gmra.mrb[8].mxu1 %vm172_vm1, %v5868_v7 }
  0x1d   :  { %5047 = vmatpush3.bf16.msra.mxu0 %v5680_v22  ;;  %5055 = vmatpush3.bf16.msra.mxu1 %v5681_v24 }
  0x1e   :  { %5048 = vmatprep.subr.bf16.mxu0 %v5788_v2  ;;  %5056 = vmatprep.subr.bf16.mxu1 %v5788_v2 }
  0x1f   :  { %5050 = vmatprep.mubr.msk.bf16.mxu0 %vm5789_vm2, %v5788_v2  ;;  %5058 = vmatprep.mubr.msk.bf16.mxu1 %vm5789_vm2, %v5788_v2 }
  0x20   :  { %3979 = vperm.xlu0 %5666, %v3949_v39  }
  0x21   :  { %5049 = vmatpush3.bf16.msra.mxu0 %v490_v26  ;;  %5057 = vmatpush3.bf16.msra.mxu1 %v542_v28 }
  0x22   :  { %5062 = vmatprep.subr.bf16.mxu0 %v5788_v2  ;;  %5070 = vmatprep.subr.bf16.mxu1 %v5788_v2 }
  0x24   :  { %5051 = vmatmul.mubr.msk.bf16.vlgmr.msra.gmra.mrb[12].mxu0 %vm172_vm1, %v5868_v7  ;;  %5059 = vmatmul.mubr.msk.bf16.vlgmr.msra.gmra.mrb[12].mxu1 %vm172_vm1, %v5868_v7 }
  0x25   :  { %5063 = vmatpush3.bf16.msra.mxu0 %v5684_v29  ;;  %5071 = vmatpush3.bf16.msra.mxu1 %v5685_v32 }
  0x26   :  { %5064 = vmatprep.subr.bf16.mxu0 %v5788_v2  ;;  %5072 = vmatprep.subr.bf16.mxu1 %v5788_v2 }
  0x27   :  { %5066 = vmatprep.mubr.msk.bf16.mxu0 %vm5789_vm2, %v5788_v2  ;;  %5074 = vmatprep.mubr.msk.bf16.mxu1 %vm5789_vm2, %v5788_v2 }
  0x28   :  { %3989 = vperm.xlu0 %5666, %v3951_v42  }
  0x29   :  { %5065 = vmatpush3.bf16.msra.mxu0 %v594_v35  ;;  %5073 = vmatpush3.bf16.msra.mxu1 %v646_v36 }
  0x2a   :  { %5078 = vmatprep.subr.bf16.mxu0 %v5788_v2  ;;  %5086 = vmatprep.subr.bf16.mxu1 %v5788_v2 }
  0x2c   :  { %5067 = vmatmul.mubr.msk.bf16.vlgmr.msra.gmra.mrb[16].mxu0 %vm172_vm1, %v5868_v7  ;;  %5075 = vmatmul.mubr.msk.bf16.vlgmr.msra.gmra.mrb[16].mxu1 %vm172_vm1, %v5868_v7 }
  0x2d   :  { %5079 = vmatpush3.bf16.msra.mxu0 %v5688_v37  ;;  %5087 = vmatpush3.bf16.msra.mxu1 %v5689_v40 }
  0x2e   :  { %5080 = vmatprep.subr.bf16.mxu0 %v5788_v2  ;;  %5088 = vmatprep.subr.bf16.mxu1 %v5788_v2 }
  0x2f   :  { %5082 = vmatprep.mubr.msk.bf16.mxu0 %vm5789_vm2, %v5788_v2  ;;  %5090 = vmatprep.mubr.msk.bf16.mxu1 %vm5789_vm2, %v5788_v2 }
  0x30   :  { %4207 = vperm.xlu0 %5666, %v4199_v47  }
  0x31   :  { %5081 = vmatpush3.bf16.msra.mxu0 %v698_v43  ;;  %5089 = vmatpush3.bf16.msra.mxu1 %v750_v44 }
  0x32   :  { %5094 = vmatprep.subr.bf16.mxu0 %v5788_v2  ;;  %5102 = vmatprep.subr.bf16.mxu1 %v5788_v2 }
  0x34   :  { %5083 = vmatmul.mubr.msk.bf16.vlgmr.msra.gmra.mrb[20].mxu0 %vm172_vm1, %v5868_v7  ;;  %5091 = vmatmul.mubr.msk.bf16.vlgmr.msra.gmra.mrb[20].mxu1 %vm172_vm1, %v5868_v7 }
  0x35   :  { %5095 = vmatpush3.bf16.msra.mxu0 %v5692_v45  ;;  %5103 = vmatpush3.bf16.msra.mxu1 %v5693_v48 }
  0x36   :  { %5096 = vmatprep.subr.bf16.mxu0 %v5788_v2  ;;  %5104 = vmatprep.subr.bf16.mxu1 %v5788_v2 }
  0x37   :  { %5098 = vmatprep.mubr.msk.bf16.mxu0 %vm5789_vm2, %v5788_v2  ;;  %5106 = vmatprep.mubr.msk.bf16.mxu1 %vm5789_vm2, %v5788_v2 }
  0x39   :  { %5097 = vmatpush3.bf16.msra.mxu0 %v802_v50  ;;  %5105 = vmatpush3.bf16.msra.mxu1 %v854_v51 }
  0x3a   :  { %5110 = vmatprep.subr.bf16.mxu0 %v5788_v2  ;;  %5118 = vmatprep.subr.bf16.mxu1 %v5788_v2 }
  0x3c   :  { %5099 = vmatmul.mubr.msk.bf16.vlgmr.msra.gmra.mrb[24].mxu0 %vm172_vm1, %v5868_v7  ;;  %5107 = vmatmul.mubr.msk.bf16.vlgmr.msra.gmra.mrb[24].mxu1 %vm172_vm1, %v5868_v7 }
  0x3d   :  { %5111 = vmatpush3.bf16.msra.mxu0 %v5696_v52  ;;  %5119 = vmatpush3.bf16.msra.mxu1 %v5697_v53 }
  0x3e   :  { %5112 = vmatprep.subr.bf16.mxu0 %v5788_v2  ;;  %5120 = vmatprep.subr.bf16.mxu1 %v5788_v2 }
  0x3f   :  { %5114 = vmatprep.mubr.msk.bf16.mxu0 %vm5789_vm2, %v5788_v2  ;;  %5122 = vmatprep.mubr.msk.bf16.mxu1 %vm5789_vm2, %v5788_v2 }
  0x41   :  { %5113 = vmatpush3.bf16.msra.mxu0 %v906_v56  ;;  %5121 = vmatpush3.bf16.msra.mxu1 %v958_v57 }
  0x42   :  { %5126 = vmatprep.subr.bf16.mxu0 %v5788_v2  ;;  %5134 = vmatprep.subr.bf16.mxu1 %v5788_v2 }
  0x44   :  { %5115 = vmatmul.mubr.msk.bf16.vlgmr.msra.gmra.mrb[28].mxu0 %vm172_vm1, %v5868_v7  ;;  %5123 = vmatmul.mubr.msk.bf16.vlgmr.msra.gmra.mrb[28].mxu1 %vm172_vm1, %v5868_v7 }
  0x45   :  { %5127 = vmatpush3.bf16.msra.mxu0 %v5700_v58  ;;  %5135 = vmatpush3.bf16.msra.mxu1 %v5701_v60 }
  0x46   :  { %5128 = vmatprep.subr.bf16.mxu0 %v5788_v2  ;;  %5136 = vmatprep.subr.bf16.mxu1 %v5788_v2 }
  0x47   :  { %5130 = vmatprep.mubr.msk.bf16.mxu0 %vm5789_vm2, %v5788_v2  ;;  %5138 = vmatprep.mubr.msk.bf16.mxu1 %vm5789_vm2, %v5788_v2 }
  0x49   :  { %5129 = vmatpush3.bf16.msra.mxu0 %v1010_v62  ;;  %5137 = vmatpush3.bf16.msra.mxu1 %v1062_v63 }
  0x4a   :  { %5142 = vmatprep.subr.bf16.mxu0 %v5788_v2  ;;  %5150 = vmatprep.subr.bf16.mxu1 %v5788_v2 }
  0x4c   :  { %5131 = vmatmul.mubr.msk.bf16.vlgmr.msra.gmra.mrb[32].mxu0 %vm172_vm1, %v5868_v7  ;;  %5139 = vmatmul.mubr.msk.bf16.vlgmr.msra.gmra.mrb[32].mxu1 %vm172_vm1, %v5868_v7 }
  0x4d   :  { %5143 = vmatpush3.bf16.msra.mxu0 %v5704_v0  ;;  %5151 = vmatpush3.bf16.msra.mxu1 %v5705_v3 }
  0x4e   :  { %5144 = vmatprep.subr.bf16.mxu0 %v5788_v2  ;;  %5152 = vmatprep.subr.bf16.mxu1 %v5788_v2 }
  0x4f   :  { %5146 = vmatprep.mubr.msk.bf16.mxu0 %vm5789_vm2, %v5788_v2  ;;  %5154 = vmatprep.mubr.msk.bf16.mxu1 %vm5789_vm2, %v5788_v2 }
  0x51   :  { %5145 = vmatpush3.bf16.msra.mxu0 %v1114_v5  ;;  %5153 = vmatpush3.bf16.msra.mxu1 %v1166_v6 }
  0x52   :  { %5158 = vmatprep.subr.bf16.mxu0 %v5788_v2  ;;  %5166 = vmatprep.subr.bf16.mxu1 %v5788_v2 }
  0x54   :  { %5147 = vmatmul.mubr.msk.bf16.vlgmr.msra.gmra.mrb[36].mxu0 %vm172_vm1, %v5868_v7  ;;  %5155 = vmatmul.mubr.msk.bf16.vlgmr.msra.gmra.mrb[36].mxu1 %vm172_vm1, %v5868_v7 }
  0x55   :  { %5159 = vmatpush3.bf16.msra.mxu0 %v5708_v8  ;;  %5167 = vmatpush3.bf16.msra.mxu1 %v5709_v10 }
  0x56   :  { %5160 = vmatprep.subr.bf16.mxu0 %v5788_v2  ;;  %5168 = vmatprep.subr.bf16.mxu1 %v5788_v2 }
  0x57   :  { %5162 = vmatprep.mubr.msk.bf16.mxu0 %vm5789_vm2, %v5788_v2  ;;  %5170 = vmatprep.mubr.msk.bf16.mxu1 %vm5789_vm2, %v5788_v2 }
  0x59   :  { %5161 = vmatpush3.bf16.msra.mxu0 %v1218_v12  ;;  %5169 = vmatpush3.bf16.msra.mxu1 %v1270_v13 }
  0x5a   :  { %5174 = vmatprep.subr.bf16.mxu0 %v5788_v2  ;;  %5182 = vmatprep.subr.bf16.mxu1 %v5788_v2 }
  0x5b   :  { %16 = vsyncpa [#allocation4], 0  ;;  %v1322_v18 = vsel %vm176_vm0, %v5714_v16, 0  ;;  %v1374_v19 = vsel %vm176_vm0, %v5715_v17, 0  ;;  %v5716_v20 = vld [vmem:[%s6943_s0 + $0x120] sm:$0xff]   ;;  %v5717_v21 = vld [vmem:[%s6943_s0 + $0x12c] sm:$0xff]  }
  0x5c   :  { %5163 = vmatmul.mubr.msk.bf16.vlgmr.msra.gmra.mrb[40].mxu0 %vm172_vm1, %v5868_v7  ;;  %5171 = vmatmul.mubr.msk.bf16.vlgmr.msra.gmra.mrb[40].mxu1 %vm172_vm1, %v5868_v7  ;;  %v5718_v22 = vld [vmem:[%s6943_s0 + $0x128] ss:$0 sps:$4 sm:$0x33]   ;;  %v5719_v23 = vld [vmem:[%s6943_s0 + $0x134] ss:$0 sps:$4 sm:$0x33]  }
  0x5d   :  { %5175 = vmatpush3.bf16.msra.mxu0 %v5712_v14  ;;  %5183 = vmatpush3.bf16.msra.mxu1 %v5713_v15  ;;  %v1426_v24 = vsel %vm176_vm0, %v5718_v22, 0  ;;  %v1478_v25 = vsel %vm176_vm0, %v5719_v23, 0  ;;  %v5720_v26 = vld [vmem:[%s6943_s0 + $0x138] sm:$0xff]   ;;  %v5721_v27 = vld [vmem:[%s6943_s0 + $0x144] sm:$0xff]   ;;  %v5724_v32 = vld [vmem:[%s6943_s0 + $0x150] sm:$0xff]   ;;  %v5791_v12 = vmov 0.0|0.0  }
  0x5e   :  { %5176 = vmatprep.subr.bf16.mxu0 %v5788_v2  ;;  %5184 = vmatprep.subr.bf16.mxu1 %v5788_v2  ;;  %v5722_v28 = vld [vmem:[%s6943_s0 + $0x140] ss:$0 sps:$4 sm:$0x33]   ;;  %v5723_v29 = vld [vmem:[%s6943_s0 + $0x14c] ss:$0 sps:$4 sm:$0x33]  }
  0x5f   :  { %5178 = vmatprep.mubr.msk.bf16.mxu0 %vm5789_vm2, %v5788_v2  ;;  %5186 = vmatprep.mubr.msk.bf16.mxu1 %vm5789_vm2, %v5788_v2  ;;  %v1530_v30 = vsel %vm176_vm0, %v5722_v28, 0  ;;  %v1582_v31 = vsel %vm176_vm0, %v5723_v29, 0  ;;  %v5725_v33 = vld [vmem:[%s6943_s0 + $0x15c] sm:$0xff]   ;;  %v5726_v34 = vld [vmem:[%s6943_s0 + $0x158] ss:$0 sps:$4 sm:$0x33]  }
  0x60   :  { %v5727_v35 = vld [vmem:[%s6943_s0 + $0x164] ss:$0 sps:$4 sm:$0x33]   ;;  %v1634_v36 = vsel %vm176_vm0, %v5726_v34, 0  ;;  %v5728_v38 = vld [vmem:[%s6943_s0 + $0x168] sm:$0xff]   ;;  %v5729_v39 = vld [vmem:[%s6943_s0 + $0x174] sm:$0xff]  }
  0x61   :  { %5177 = vmatpush3.bf16.msra.mxu0 %v1322_v18  ;;  %5185 = vmatpush3.bf16.msra.mxu1 %v1374_v19  ;;  %v1686_v37 = vsel %vm176_vm0, %v5727_v35, 0  ;;  %v5730_v40 = vld [vmem:[%s6943_s0 + $0x170] ss:$0 sps:$4 sm:$0x33]   ;;  %v5732_v44 = vld [vmem:[%s6943_s0 + $0x180] sm:$0xff]   ;;  %v5736_v50 = vld [vmem:[%s6943_s0 + $0x198] sm:$0xff]  }
  0x62   :  { %5190 = vmatprep.subr.bf16.mxu0 %v5788_v2  ;;  %5198 = vmatprep.subr.bf16.mxu1 %v5788_v2  ;;  %v5731_v41 = vld [vmem:[%s6943_s0 + $0x17c] ss:$0 sps:$4 sm:$0x33]   ;;  %v1738_v42 = vsel %vm176_vm0, %v5730_v40, 0  ;;  %v5733_v45 = vld [vmem:[%s6943_s0 + $0x18c] sm:$0xff]   ;;  %v5737_v51 = vld [vmem:[%s6943_s0 + $0x1a4] sm:$0xff]  }
  0x63   :  { %v1790_v43 = vsel %vm176_vm0, %v5731_v41, 0  ;;  %v5734_v46 = vld [vmem:[%s6943_s0 + $0x188] ss:$0 sps:$4 sm:$0x33]   ;;  %v5740_v56 = vld [vmem:[%s6943_s0 + $0x1b0] sm:$0xff]   ;;  %v5741_v57 = vld [vmem:[%s6943_s0 + $0x1bc] sm:$0xff]  }
  0x64   :  { %5179 = vmatmul.mubr.msk.bf16.vlgmr.msra.gmra.mrb[44].mxu0 %vm172_vm1, %v5868_v7  ;;  %5187 = vmatmul.mubr.msk.bf16.vlgmr.msra.gmra.mrb[44].mxu1 %vm172_vm1, %v5868_v7  ;;  %v5735_v47 = vld [vmem:[%s6943_s0 + $0x194] ss:$0 sps:$4 sm:$0x33]   ;;  %v1842_v48 = vsel %vm176_vm0, %v5734_v46, 0  ;;  %v5744_v62 = vld [vmem:[%s6943_s0 + $0x1c8] sm:$0xff]   ;;  %v5748_v5 = vld [vmem:[%s6943_s0 + $0x1e0] sm:$0xff]  }
  0x65   :  { %5191 = vmatpush3.bf16.msra.mxu0 %v5716_v20  ;;  %5199 = vmatpush3.bf16.msra.mxu1 %v5717_v21  ;;  %v1894_v49 = vsel %vm176_vm0, %v5735_v47, 0  ;;  %v5738_v52 = vld [vmem:[%s6943_s0 + $0x1a0] ss:$0 sps:$4 sm:$0x33]   ;;  %v5745_v63 = vld [vmem:[%s6943_s0 + $0x1d4] sm:$0xff]   ;;  %v5749_v6 = vld [vmem:[%s6943_s0 + $0x1ec] sm:$0xff]  }
  0x66   :  { %5192 = vmatprep.subr.bf16.mxu0 %v5788_v2  ;;  %5200 = vmatprep.subr.bf16.mxu1 %v5788_v2  ;;  %v5739_v53 = vld [vmem:[%s6943_s0 + $0x1ac] ss:$0 sps:$4 sm:$0x33]   ;;  %v1946_v54 = vsel %vm176_vm0, %v5738_v52, 0  ;;  %vm2490_vm3 = vcmask 326656   ;;  %vm2503_vm4 = vcmask 1043456  }
  0x67   :  { %5194 = vmatprep.mubr.msk.bf16.mxu0 %vm5789_vm2, %v5788_v2  ;;  %5202 = vmatprep.mubr.msk.bf16.mxu1 %vm5789_vm2, %v5788_v2  ;;  %v1998_v55 = vsel %vm176_vm0, %v5739_v53, 0  ;;  %v5742_v58 = vld [vmem:[%s6943_s0 + $0x1b8] ss:$0 sps:$4 sm:$0x33]   ;;  %v5763_v13 = vld [vmem:[%s6944_s1] sm:$0xf] }
  0x68   :  { %v5743_v59 = vld [vmem:[%s6943_s0 + $0x1c4] ss:$0 sps:$4 sm:$0x33]   ;;  %v2050_v60 = vsel %vm176_vm0, %v5742_v58, 0  ;;  %v3945_v15 = vld [vmem:[%s6947_s4 + $0x8] sm:$0xff]  ;;  %vm4372_vm5 = vcmask 130048  }
  0x69   :  { %5193 = vmatpush3.bf16.msra.mxu0 %v1426_v24  ;;  %5201 = vmatpush3.bf16.msra.mxu1 %v1478_v25  ;;  %v2102_v61 = vsel %vm176_vm0, %v5743_v59, 0  ;;  %v5746_v0 = vld [vmem:[%s6943_s0 + $0x1d0] ss:$0 sps:$4 sm:$0x33]   ;;  %s5792_s12 = smov [#allocation3]  }
  0x6a   :  { %5206 = vmatprep.subr.bf16.mxu0 %v5788_v2  ;;  %5214 = vmatprep.subr.bf16.mxu1 %v5788_v2  ;;  %v5747_v1 = vld [vmem:[%s6943_s0 + $0x1dc] ss:$0 sps:$4 sm:$0x33]   ;;  %v2154_v3 = vsel %vm176_vm0, %v5746_v0, 0  ;;  %v3946_v24 = vld [vmem:[%s6947_s4 + $0x10] sm:$0xff]  ;;  %s4453_s13 = sshll.u32 %s5792_s12, 4  ;;  %s4454_s13 = int_to_ptr.vmem [resolvable:$true] %s4453_s13 }
  0x6b   :  { %v2206_v4 = vsel %vm176_vm0, %v5747_v1, 0  ;;  %v5750_v8 = vld [vmem:[%s6943_s0 + $0x1e8] ss:$0 sps:$4 sm:$0x33]   ;;  %3959 = vperm.xlu1 %5667, %v3945_v15   ;;  %s5764_s14 = scalar_lea.vmem %s4454_s13, 16  ;;  %s5768_s1 = scalar_lea.vmem %s4454_s13, 32 }
  0x6c   :  { %5195 = vmatmul.mubr.msk.bf16.vlgmr.msra.gmra.mrb[48].mxu0 %vm172_vm1, %v5868_v7  ;;  %5203 = vmatmul.mubr.msk.bf16.vlgmr.msra.gmra.mrb[48].mxu1 %vm172_vm1, %v5868_v7  ;;  %v5751_v9 = vld [vmem:[%s6943_s0 + $0x1f4] ss:$0 sps:$4 sm:$0x33]   ;;  %v2258_v10 = vsel %vm176_vm0, %v5750_v8, 0  ;;  %p5765_p0 = scmp.ne.s32.totalorder %s4454_s13, %s5764_s14  ;;  %p5769_p1 = scmp.lt.s32.totalorder %s4454_s13, %s4454_s13 }
  0x6d   :  { %5207 = vmatpush3.bf16.msra.mxu0 %v5720_v26  ;;  %5215 = vmatpush3.bf16.msra.mxu1 %v5721_v27  ;;  %v2310_v11 = vsel %vm176_vm0, %v5751_v9, 0  ;;  %v3948_v27 = vld [vmem:[%s6947_s4 + $0x20] sm:$0xff]  ;;  %p5770_p2 = scmp.lt.s32.totalorder %s5768_s1, %s5764_s14 }
  0x6e   :  { %5208 = vmatprep.subr.bf16.mxu0 %v5788_v2  ;;  %5216 = vmatprep.subr.bf16.mxu1 %v5788_v2 }
  0x6f   :  { %5210 = vmatprep.mubr.msk.bf16.mxu0 %vm5789_vm2, %v5788_v2  ;;  %5218 = vmatprep.mubr.msk.bf16.mxu1 %vm5789_vm2, %v5788_v2  ;;  %p5771_p3 = por %p5770_p2, %p5769_p1 }
  0x70   :  { %3964 = vperm.xlu1 %5667, %v3946_v24  }
  0x71   :  { %5209 = vmatpush3.bf16.msra.mxu0 %v1530_v30  ;;  %5217 = vmatpush3.bf16.msra.mxu1 %v1582_v31  ;;  %p5772_p4 = pnand %p5771_p3, %p5765_p0 }
  0x72   :  { %5222 = vmatprep.subr.bf16.mxu0 %v5788_v2  ;;  %5230 = vmatprep.subr.bf16.mxu1 %v5788_v2 }
  0x74   :  { %5211 = vmatmul.mubr.msk.bf16.vlgmr.msra.gmra.mrb[52].mxu0 %vm172_vm1, %v5868_v7  ;;  %5219 = vmatmul.mubr.msk.bf16.vlgmr.msra.gmra.mrb[52].mxu1 %vm172_vm1, %v5868_v7 }
  0x75   :  { %5223 = vmatpush3.bf16.msra.mxu0 %v5724_v32  ;;  %5231 = vmatpush3.bf16.msra.mxu1 %v5725_v33 }
  0x76   :  { %5224 = vmatprep.subr.bf16.mxu0 %v5788_v2  ;;  %5232 = vmatprep.subr.bf16.mxu1 %v5788_v2 }
  0x77   :  { %5226 = vmatprep.mubr.msk.bf16.mxu0 %vm5789_vm2, %v5788_v2  ;;  %5234 = vmatprep.mubr.msk.bf16.mxu1 %vm5789_vm2, %v5788_v2 }
  0x78   :  { %3974 = vperm.xlu1 %5667, %v3948_v27  }
  0x79   :  { %5225 = vmatpush3.bf16.msra.mxu0 %v1634_v36  ;;  %5233 = vmatpush3.bf16.msra.mxu1 %v1686_v37 }
  0x7a   :  { %5238 = vmatprep.subr.bf16.mxu0 %v5788_v2  ;;  %5246 = vmatprep.subr.bf16.mxu1 %v5788_v2 }
  0x7c   :  { %5227 = vmatmul.mubr.msk.bf16.vlgmr.msra.gmra.mrb[56].mxu0 %vm172_vm1, %v5868_v7  ;;  %5235 = vmatmul.mubr.msk.bf16.vlgmr.msra.gmra.mrb[56].mxu1 %vm172_vm1, %v5868_v7 }
  0x7d   :  { %5239 = vmatpush3.bf16.msra.mxu0 %v5728_v38  ;;  %5247 = vmatpush3.bf16.msra.mxu1 %v5729_v39  ;;  %v3950_v38 = vld [vmem:[%s6947_s4 + $0x30] sm:$0xff] }
  0x7e   :  { %5240 = vmatprep.subr.bf16.mxu0 %v5788_v2  ;;  %5248 = vmatprep.subr.bf16.mxu1 %v5788_v2 }
  0x7f   :  { %5242 = vmatprep.mubr.msk.bf16.mxu0 %vm5789_vm2, %v5788_v2  ;;  %5250 = vmatprep.mubr.msk.bf16.mxu1 %vm5789_vm2, %v5788_v2 }
  0x80   :  { %3984 = vperm.xlu1 %5667, %v3950_v38  }
  0x81   :  { %5241 = vmatpush3.bf16.msra.mxu0 %v1738_v42  ;;  %5249 = vmatpush3.bf16.msra.mxu1 %v1790_v43 }
  0x82   :  { %5254 = vmatprep.subr.bf16.mxu0 %v5788_v2  ;;  %5262 = vmatprep.subr.bf16.mxu1 %v5788_v2 }
  0x84   :  { %5243 = vmatmul.mubr.msk.bf16.vlgmr.msra.gmra.mrb[60].mxu0 %vm172_vm1, %v5868_v7  ;;  %5251 = vmatmul.mubr.msk.bf16.vlgmr.msra.gmra.mrb[60].mxu1 %vm172_vm1, %v5868_v7 }
  0x85   :  { %5255 = vmatpush3.bf16.msra.mxu0 %v5732_v44  ;;  %5263 = vmatpush3.bf16.msra.mxu1 %v5733_v45 }
  0x86   :  { %5256 = vmatprep.subr.bf16.mxu0 %v5788_v2  ;;  %5264 = vmatprep.subr.bf16.mxu1 %v5788_v2 }
  0x87   :  { %5258 = vmatprep.mubr.msk.bf16.mxu0 %vm5789_vm2, %v5788_v2  ;;  %5266 = vmatprep.mubr.msk.bf16.mxu1 %vm5789_vm2, %v5788_v2 }
  0x89   :  { %5257 = vmatpush3.bf16.msra.mxu0 %v1842_v48  ;;  %5265 = vmatpush3.bf16.msra.mxu1 %v1894_v49 }
  0x8a   :  { %5270 = vmatprep.subr.bf16.mxu0 %v5788_v2  ;;  %5278 = vmatprep.subr.bf16.mxu1 %v5788_v2  ;;  %v6433_v25 = vpop.permute.xlu0 %2376 }
  0x8c   :  { %5259 = vmatmul.mubr.msk.bf16.vlgmr.msra.gmra.mrb[64].mxu0 %vm172_vm1, %v5868_v7  ;;  %5267 = vmatmul.mubr.msk.bf16.vlgmr.msra.gmra.mrb[64].mxu1 %vm172_vm1, %v5868_v7 }
  0x8d   :  { %5271 = vmatpush3.bf16.msra.mxu0 %v5736_v50  ;;  %5279 = vmatpush3.bf16.msra.mxu1 %v5737_v51 }
  0x8e   :  { %5272 = vmatprep.subr.bf16.mxu0 %v5788_v2  ;;  %5280 = vmatprep.subr.bf16.mxu1 %v5788_v2 }
  0x8f   :  { %5274 = vmatprep.mubr.msk.bf16.mxu0 %vm5789_vm2, %v5788_v2  ;;  %5282 = vmatprep.mubr.msk.bf16.mxu1 %vm5789_vm2, %v5788_v2 }
  0x91   :  { %5273 = vmatpush3.bf16.msra.mxu0 %v1946_v54  ;;  %5281 = vmatpush3.bf16.msra.mxu1 %v1998_v55 }
  0x92   :  { %5286 = vmatprep.subr.bf16.mxu0 %v5788_v2  ;;  %5294 = vmatprep.subr.bf16.mxu1 %v5788_v2 }
  0x94   :  { %5275 = vmatmul.mubr.msk.bf16.vlgmr.msra.gmra.mrb[68].mxu0 %vm172_vm1, %v5868_v7  ;;  %5283 = vmatmul.mubr.msk.bf16.vlgmr.msra.gmra.mrb[68].mxu1 %vm172_vm1, %v5868_v7 }
  0x95   :  { %5287 = vmatpush3.bf16.msra.mxu0 %v5740_v56  ;;  %5295 = vmatpush3.bf16.msra.mxu1 %v5741_v57 }
  0x96   :  { %5288 = vmatprep.subr.bf16.mxu0 %v5788_v2  ;;  %5296 = vmatprep.subr.bf16.mxu1 %v5788_v2 }
  0x97   :  { %5290 = vmatprep.mubr.msk.bf16.mxu0 %vm5789_vm2, %v5788_v2  ;;  %5298 = vmatprep.mubr.msk.bf16.mxu1 %vm5789_vm2, %v5788_v2 }
  0x99   :  { %5289 = vmatpush3.bf16.msra.mxu0 %v2050_v60  ;;  %5297 = vmatpush3.bf16.msra.mxu1 %v2102_v61 }
  0x9a   :  { %5302 = vmatprep.subr.bf16.mxu0 %v5788_v2  ;;  %5310 = vmatprep.subr.bf16.mxu1 %v5788_v2 }
  0x9c   :  { %5291 = vmatmul.mubr.msk.bf16.vlgmr.msra.gmra.mrb[72].mxu0 %vm172_vm1, %v5868_v7  ;;  %5299 = vmatmul.mubr.msk.bf16.vlgmr.msra.gmra.mrb[72].mxu1 %vm172_vm1, %v5868_v7 }
  0x9d   :  { %5303 = vmatpush3.bf16.msra.mxu0 %v5744_v62  ;;  %5311 = vmatpush3.bf16.msra.mxu1 %v5745_v63  ;;  %v6452_v62 = vld [vmem:[%s6946_s3 + $0x8] sm:$0xff]  }
  0x9e   :  { %5304 = vmatprep.subr.bf16.mxu0 %v5788_v2  ;;  %5312 = vmatprep.subr.bf16.mxu1 %v5788_v2 }
  0x9f   :  { %5306 = vmatprep.mubr.msk.bf16.mxu0 %vm5789_vm2, %v5788_v2  ;;  %5314 = vmatprep.mubr.msk.bf16.mxu1 %vm5789_vm2, %v5788_v2 }
  0xa1   :  { %5305 = vmatpush3.bf16.msra.mxu0 %v2154_v3  ;;  %5313 = vmatpush3.bf16.msra.mxu1 %v2206_v4  ;;  %v6457_v3 = vld [vmem:[%s6946_s3 + $0x10] sm:$0xff]  }
  0xa2   :  { %5318 = vmatprep.subr.bf16.mxu0 %v5788_v2  ;;  %5326 = vmatprep.subr.bf16.mxu1 %v5788_v2 }
  0xa4   :  { %5307 = vmatmul.mubr.msk.bf16.vlgmr.msra.gmra.mrb[76].mxu0 %vm172_vm1, %v5868_v7  ;;  %5315 = vmatmul.mubr.msk.bf16.vlgmr.msra.gmra.mrb[76].mxu1 %vm172_vm1, %v5868_v7  ;;  %v6414_v7 = vld [vmem:[%s6946_s3] sm:$0xff]  }
  0xa5   :  { %5319 = vmatpush3.bf16.msra.mxu0 %v5748_v5  ;;  %5327 = vmatpush3.bf16.msra.mxu1 %v5749_v6 }
  0xa6   :  { %5320 = vmatprep.subr.bf16.mxu0 %v5788_v2  ;;  %5328 = vmatprep.subr.bf16.mxu1 %v5788_v2 }
  0xa7   :  { %5322 = vmatprep.mubr.msk.bf16.mxu0 %vm5789_vm2, %v5788_v2  ;;  %5330 = vmatprep.mubr.msk.bf16.mxu1 %vm5789_vm2, %v5788_v2 }
  0xa9   :  { %5321 = vmatpush3.bf16.msra.mxu0 %v2258_v10  ;;  %5329 = vmatpush3.bf16.msra.mxu1 %v2310_v11 }
  0xaa   :  { %5334 = vmatprep.subr.bf16.mxu1 %v5791_v12 }
  0xac   :  { %5323 = vmatmul.mubr.msk.bf16.vlgmr.msra.gmra.mrb[80].mxu0 %vm172_vm1, %v5763_v13  ;;  %5331 = vmatmul.mubr.msk.bf16.vlgmr.msra.gmra.mrb[80].mxu1 %vm172_vm1, %v5763_v13 }
  0xad   :  { %5368 = vmatprep.mubr.msk.bf16.mxu0 %vm2490_vm3, %v6414_v7  ;;  %5335 = vmatpush3.bf16.msra.mxu1 %v5791_v12 }
  0xae   :  { %5340 = vmatprep.mubr.msk.bf16.mxu1 %vm2490_vm3, %v6414_v7 }
  0xdf   :  { %v214_v14 = vpop.f32.mrb[0].mxu0  ;;  %v266_v16 = vpop.f32.mrb[0].mxu1 }
  0xe0   :  { %v5004_v17 = vpop.f32.mrb[1].mxu0  ;;  %v2352_v18 = vmax.f32 %v214_v14, %v266_v16  ;;  %v5012_v19 = vpop.f32.mrb[1].mxu1  ;;  %v6468_v16 = vld [vmem:[%s6946_s3 + $0x18] sm:$0xff]  }
  0xe1   :  { %v217_v20 = vpop.f32.mrb[2].mxu0  ;;  %v269_v21 = vpop.f32.mrb[2].mxu1 }
  0xe2   :  { %v5005_v22 = vpop.f32.mrb[3].mxu0  ;;  %v5013_v23 = vpop.f32.mrb[3].mxu1  ;;  %v2379_v30 = vadd.f32 %v6433_v25, %v2352_v18 }
  0xe4   :  { %v2400_v39 = vmax.f32 %v2379_v30, 0.0 }
  0xe6   :  { %v2424_v60 = vpack.c.bf16 %v2400_v39, %v5788_v2 }
  0xe7   :  { %v318_v26 = vpop.f32.mrb[4].mxu0  ;;  %v370_v28 = vpop.f32.mrb[4].mxu1 }
  0xe8   :  { %v5020_v29 = vpop.f32.mrb[5].mxu0  ;;  %v2353_v31 = vmax.f32 %v318_v26, %v370_v28  ;;  %v5028_v32 = vpop.f32.mrb[5].mxu1 }
  0xe9   :  { %v321_v33 = vpop.f32.mrb[6].mxu0  ;;  %v373_v34 = vpop.f32.mrb[6].mxu1 }
  0xea   :  { %v5021_v35 = vpop.f32.mrb[7].mxu0  ;;  %v2380_v36 = vadd.f32 %v6433_v25, %v2353_v31  ;;  %v5029_v37 = vpop.f32.mrb[7].mxu1 }
  0xec   :  { %v2401_v40 = vmax.f32 %v2380_v36, 0.0 }
  0xee   :  { %v2422_v41 = vpack.c.bf16 %v2401_v40, %v2400_v39 }
  0xef   :  { %v422_v42 = vpop.f32.mrb[8].mxu0  ;;  %v474_v43 = vpop.f32.mrb[8].mxu1 }
  0xf0   :  { %v5036_v44 = vpop.f32.mrb[9].mxu0  ;;  %v2354_v45 = vmax.f32 %v422_v42, %v474_v43  ;;  %v5044_v46 = vpop.f32.mrb[9].mxu1  ;;  %5336 = vmatprep.subr.bf16.mxu1 %v2422_v41  ;;  %5362 = vmatprep.subr.bf16.mxu0 %v2422_v41 }
  0xf1   :  { %v425_v47 = vpop.f32.mrb[10].mxu0  ;;  %v477_v48 = vpop.f32.mrb[10].mxu1  ;;  %5337 = vmatpush3.bf16.msra.mxu1 %v2422_v41  ;;  %5363 = vmatpush3.bf16.msra.mxu0 %v2422_v41 }
  0xf2   :  { %v5037_v49 = vpop.f32.mrb[11].mxu0  ;;  %v2381_v50 = vadd.f32 %v6433_v25, %v2354_v45  ;;  %v5045_v51 = vpop.f32.mrb[11].mxu1 }
  0xf4   :  { %v2402_v52 = vmax.f32 %v2381_v50, 0.0 }
  0xf6   :  { %v2423_v54 = vpack.c.bf16 %v2402_v52, %v2402_v52  ;;  %v6444_v55 = vpack.c.bf16 %v2402_v52, %v2401_v40 }
  0xf7   :  { %v526_v53 = vpop.f32.mrb[12].mxu0  ;;  %v578_v56 = vpop.f32.mrb[12].mxu1 }
  0xf8   :  { %v5052_v57 = vpop.f32.mrb[13].mxu0  ;;  %v2355_v58 = vmax.f32 %v526_v53, %v578_v56  ;;  %5642 = vmatprep.subr.msk.bf16.mxu1 %vm2503_vm4, %v2423_v54  ;;  %v2505_v59 = vsel %vm2503_vm4, %v2423_v54, 0  ;;  %v5060_v61 = vpop.f32.mrb[13].mxu1 }
  0xf9   :  { %v529_v63 = vpop.f32.mrb[14].mxu0  ;;  %5339 = vmatpush3.bf16.msra.mxu1 %v2505_v59  ;;  %v581_v0 = vpop.f32.mrb[14].mxu1 }
  0xfa   :  { %v5053_v1 = vpop.f32.mrb[15].mxu0  ;;  %v2382_v4 = vadd.f32 %v6433_v25, %v2355_v58  ;;  %5348 = vmatprep.subr.bf16.mxu1 %v2424_v60  ;;  %v5061_v5 = vpop.f32.mrb[15].mxu1 }
  0xfc   :  { %v2403_v6 = vmax.f32 %v2382_v4, 0.0  ;;  %5341 = vmatmul.mubr.msk.bf16.vlgmr.msra.gmra.mrb[84].mxu1 %vm2490_vm3, %v6452_v62 }
  0xfd   :  { %5349 = vmatpush3.bf16.msra.mxu1 %v2424_v60  ;;  %5344 = vmatprep.mubr.msk.bf16.mxu1 %vm2490_vm3, %v6457_v3 }
  0xfe   :  { %5350 = vmatprep.subr.bf16.mxu1 %v6444_v55  ;;  %v2427_v9 = vpack.c.bf16 %v2403_v6, %v2402_v52  ;;  %v2426_v14 = vpack.c.bf16 %v2403_v6, %v2403_v6 }
  0xff   :  { %v630_v8 = vpop.f32.mrb[16].mxu0  ;;  %v682_v10 = vpop.f32.mrb[16].mxu1 }
 0x100   :  { %v5068_v11 = vpop.f32.mrb[17].mxu0  ;;  %v2356_v13 = vmax.f32 %v630_v8, %v682_v10  ;;  %5364 = vmatprep.subr.bf16.mxu0 %v2427_v9  ;;  %v5076_v15 = vpop.f32.mrb[17].mxu1  ;;  %v2573_v23 = vsel %vm2503_vm4, %v2426_v14, 0 }
 0x101   :  { %v633_v17 = vpop.f32.mrb[18].mxu0  ;;  %5351 = vmatpush3.bf16.msra.mxu1 %v6444_v55  ;;  %5365 = vmatpush3.bf16.msra.mxu0 %v2427_v9  ;;  %v685_v18 = vpop.f32.mrb[18].mxu1 }
 0x102   :  { %v5069_v19 = vpop.f32.mrb[19].mxu0  ;;  %v2383_v20 = vadd.f32 %v6433_v25, %v2356_v13  ;;  %5643 = vmatprep.subr.msk.bf16.mxu1 %vm2503_vm4, %v2426_v14  ;;  %v5077_v21 = vpop.f32.mrb[19].mxu1 }
 0x104   :  { %v2404_v22 = vmax.f32 %v2383_v20, 0.0  ;;  %5345 = vmatmul.mubr.msk.bf16.gmra.mrb[88].mxu1 %vm2490_vm3, %v6468_v16 }
 0x105   :  { %5353 = vmatpush3.bf16.msra.mxu1 %v2573_v23  ;;  %5354 = vmatprep.mubr.msk.bf16.mxu1 %vm2490_vm3, %v6414_v7  ;;  %v4198_v23 = vld [vmem:[%s6949_s6] sm:$0xff] }
 0x106   :  { %5376 = vmatprep.subr.bf16.mxu1 %v6444_v55  ;;  %v2428_v26 = vpack.c.bf16 %v2404_v22, %v2404_v22  ;;  %v6479_v27 = vpack.c.bf16 %v2404_v22, %v2403_v6  ;;  %4202 = vperm.xlu1 %5667, %v4198_v23  }
 0x107   :  { %v734_v24 = vpop.f32.mrb[20].mxu0  ;;  %v786_v28 = vpop.f32.mrb[20].mxu1 }
 0x108   :  { %v5084_v29 = vpop.f32.mrb[21].mxu0  ;;  %v2357_v30 = vmax.f32 %v734_v24, %v786_v28  ;;  %5644 = vmatprep.subr.msk.bf16.mxu0 %vm2503_vm4, %v2428_v26  ;;  %v2641_v31 = vsel %vm2503_vm4, %v2428_v26, 0  ;;  %v5092_v32 = vpop.f32.mrb[21].mxu1 }
 0x109   :  { %v737_v33 = vpop.f32.mrb[22].mxu0  ;;  %5367 = vmatpush3.bf16.msra.mxu0 %v2641_v31  ;;  %v789_v34 = vpop.f32.mrb[22].mxu1 }
 0x10a   :  { %v5085_v35 = vpop.f32.mrb[23].mxu0  ;;  %v2384_v36 = vadd.f32 %v6433_v25, %v2357_v30  ;;  %5390 = vmatprep.subr.bf16.mxu0 %v2427_v9  ;;  %v5093_v37 = vpop.f32.mrb[23].mxu1  ;;  %v4362_v34 = vld [vmem:[#allocation2] sm:$0x1] }
 0x10b   :  { %4365 = vperm.xlu1 %5667, %v4362_v34  }
 0x10c   :  { %v2405_v38 = vmax.f32 %v2384_v36, 0.0  ;;  %5355 = vmatmul.mubr.msk.bf16.vlgmr.msra.gmra.mrb[92].mxu1 %vm2490_vm3, %v6452_v62  ;;  %5369 = vmatmul.mubr.msk.bf16.vlgmr.msra.gmra.mrb[84].mxu0 %vm2490_vm3, %v6452_v62 }
 0x10d   :  { %5377 = vmatpush3.bf16.msra.mxu1 %v6444_v55  ;;  %5391 = vmatpush3.bf16.msra.mxu0 %v2427_v9 }
 0x10e   :  { %5378 = vmatprep.subr.bf16.mxu1 %v6479_v27  ;;  %v2431_v40 = vpack.c.bf16 %v2405_v38, %v2404_v22  ;;  %v2430_v41 = vpack.c.bf16 %v2405_v38, %v2405_v38  ;;  %5358 = vmatprep.mubr.msk.bf16.mxu1 %vm2490_vm3, %v6457_v3 }
 0x10f   :  { %v838_v39 = vpop.f32.mrb[24].mxu0  ;;  %v890_v42 = vpop.f32.mrb[24].mxu1  ;;  %5372 = vmatprep.mubr.msk.bf16.mxu0 %vm2490_vm3, %v6457_v3 }
 0x110   :  { %v5100_v43 = vpop.f32.mrb[25].mxu0  ;;  %v2358_v44 = vmax.f32 %v838_v39, %v890_v42  ;;  %5392 = vmatprep.subr.bf16.mxu0 %v2431_v40  ;;  %v5108_v45 = vpop.f32.mrb[25].mxu1  ;;  %v2709_v52 = vsel %vm2503_vm4, %v2430_v41, 0 }
 0x111   :  { %v841_v46 = vpop.f32.mrb[26].mxu0  ;;  %5379 = vmatpush3.bf16.msra.mxu1 %v6479_v27  ;;  %5393 = vmatpush3.bf16.msra.mxu0 %v2431_v40  ;;  %v893_v47 = vpop.f32.mrb[26].mxu1 }
 0x112   :  { %v5101_v48 = vpop.f32.mrb[27].mxu0  ;;  %v2385_v49 = vadd.f32 %v6433_v25, %v2358_v44  ;;  %5645 = vmatprep.subr.msk.bf16.mxu1 %vm2503_vm4, %v2430_v41  ;;  %v5109_v50 = vpop.f32.mrb[27].mxu1 }
 0x114   :  { %v2406_v51 = vmax.f32 %v2385_v49, 0.0  ;;  %5359 = vmatmul.mubr.msk.bf16.gmra.mrb[96].mxu1 %vm2490_vm3, %v6468_v16  ;;  %5373 = vmatmul.mubr.msk.bf16.gmra.mrb[88].mxu0 %vm2490_vm3, %v6468_v16 }
 0x115   :  { %5381 = vmatpush3.bf16.msra.mxu1 %v2709_v52  ;;  %5382 = vmatprep.mubr.msk.bf16.mxu1 %vm2490_vm3, %v6414_v7 }
 0x116   :  { %5404 = vmatprep.subr.bf16.mxu1 %v6479_v27  ;;  %v2432_v54 = vpack.c.bf16 %v2406_v51, %v2406_v51  ;;  %5396 = vmatprep.mubr.msk.bf16.mxu0 %vm2490_vm3, %v6414_v7  ;;  %v6507_v55 = vpack.c.bf16 %v2406_v51, %v2405_v38 }
 0x117   :  { %v942_v53 = vpop.f32.mrb[28].mxu0  ;;  %v994_v56 = vpop.f32.mrb[28].mxu1 }
 0x118   :  { %v5116_v57 = vpop.f32.mrb[29].mxu0  ;;  %v2359_v58 = vmax.f32 %v942_v53, %v994_v56  ;;  %5646 = vmatprep.subr.msk.bf16.mxu0 %vm2503_vm4, %v2432_v54  ;;  %v2777_v59 = vsel %vm2503_vm4, %v2432_v54, 0  ;;  %v5124_v60 = vpop.f32.mrb[29].mxu1 }
 0x119   :  { %v945_v61 = vpop.f32.mrb[30].mxu0  ;;  %5395 = vmatpush3.bf16.msra.mxu0 %v2777_v59  ;;  %v997_v63 = vpop.f32.mrb[30].mxu1 }
 0x11a   :  { %v5117_v0 = vpop.f32.mrb[31].mxu0  ;;  %v2386_v1 = vadd.f32 %v6433_v25, %v2359_v58  ;;  %5418 = vmatprep.subr.bf16.mxu0 %v2431_v40  ;;  %v5125_v4 = vpop.f32.mrb[31].mxu1 }
 0x11c   :  { %v2407_v5 = vmax.f32 %v2386_v1, 0.0  ;;  %5383 = vmatmul.mubr.msk.bf16.vlgmr.msra.gmra.mrb[100].mxu1 %vm2490_vm3, %v6452_v62  ;;  %5397 = vmatmul.mubr.msk.bf16.vlgmr.msra.gmra.mrb[92].mxu0 %vm2490_vm3, %v6452_v62 }
 0x11d   :  { %5405 = vmatpush3.bf16.msra.mxu1 %v6479_v27  ;;  %5419 = vmatpush3.bf16.msra.mxu0 %v2431_v40 }
 0x11e   :  { %5406 = vmatprep.subr.bf16.mxu1 %v6507_v55  ;;  %v2435_v8 = vpack.c.bf16 %v2407_v5, %v2406_v51  ;;  %v2434_v9 = vpack.c.bf16 %v2407_v5, %v2407_v5  ;;  %5386 = vmatprep.mubr.msk.bf16.mxu1 %vm2490_vm3, %v6457_v3 }
 0x11f   :  { %v1046_v6 = vpop.f32.mrb[32].mxu0  ;;  %v1098_v10 = vpop.f32.mrb[32].mxu1  ;;  %5400 = vmatprep.mubr.msk.bf16.mxu0 %vm2490_vm3, %v6457_v3 }
 0x120   :  { %v5132_v11 = vpop.f32.mrb[33].mxu0  ;;  %v2360_v13 = vmax.f32 %v1046_v6, %v1098_v10  ;;  %5420 = vmatprep.subr.bf16.mxu0 %v2435_v8  ;;  %v5140_v14 = vpop.f32.mrb[33].mxu1  ;;  %v2845_v22 = vsel %vm2503_vm4, %v2434_v9, 0 }
 0x121   :  { %v1049_v15 = vpop.f32.mrb[34].mxu0  ;;  %5407 = vmatpush3.bf16.msra.mxu1 %v6507_v55  ;;  %5421 = vmatpush3.bf16.msra.mxu0 %v2435_v8  ;;  %v1101_v17 = vpop.f32.mrb[34].mxu1 }
 0x122   :  { %v5133_v18 = vpop.f32.mrb[35].mxu0  ;;  %v2387_v19 = vadd.f32 %v6433_v25, %v2360_v13  ;;  %5647 = vmatprep.subr.msk.bf16.mxu1 %vm2503_vm4, %v2434_v9  ;;  %v5141_v20 = vpop.f32.mrb[35].mxu1 }
 0x124   :  { %v2408_v21 = vmax.f32 %v2387_v19, 0.0  ;;  %5387 = vmatmul.mubr.msk.bf16.gmra.mrb[104].mxu1 %vm2490_vm3, %v6468_v16  ;;  %5401 = vmatmul.mubr.msk.bf16.gmra.mrb[96].mxu0 %vm2490_vm3, %v6468_v16 }
 0x125   :  { %5409 = vmatpush3.bf16.msra.mxu1 %v2845_v22  ;;  %5410 = vmatprep.mubr.msk.bf16.mxu1 %vm2490_vm3, %v6414_v7 }
 0x126   :  { %5432 = vmatprep.subr.bf16.mxu1 %v6507_v55  ;;  %v2436_v26 = vpack.c.bf16 %v2408_v21, %v2408_v21  ;;  %5424 = vmatprep.mubr.msk.bf16.mxu0 %vm2490_vm3, %v6414_v7  ;;  %v6538_v27 = vpack.c.bf16 %v2408_v21, %v2407_v5 }
 0x127   :  { %v1150_v24 = vpop.f32.mrb[36].mxu0  ;;  %v1202_v28 = vpop.f32.mrb[36].mxu1 }
 0x128   :  { %v5148_v29 = vpop.f32.mrb[37].mxu0  ;;  %v2361_v30 = vmax.f32 %v1150_v24, %v1202_v28  ;;  %5648 = vmatprep.subr.msk.bf16.mxu0 %vm2503_vm4, %v2436_v26  ;;  %v2913_v31 = vsel %vm2503_vm4, %v2436_v26, 0  ;;  %v5156_v32 = vpop.f32.mrb[37].mxu1 }
 0x129   :  { %v1153_v33 = vpop.f32.mrb[38].mxu0  ;;  %5423 = vmatpush3.bf16.msra.mxu0 %v2913_v31  ;;  %v1205_v35 = vpop.f32.mrb[38].mxu1 }
 0x12a   :  { %v5149_v36 = vpop.f32.mrb[39].mxu0  ;;  %v2388_v37 = vadd.f32 %v6433_v25, %v2361_v30  ;;  %5446 = vmatprep.subr.bf16.mxu0 %v2435_v8  ;;  %v5157_v38 = vpop.f32.mrb[39].mxu1 }
 0x12c   :  { %v2409_v39 = vmax.f32 %v2388_v37, 0.0  ;;  %5411 = vmatmul.mubr.msk.bf16.vlgmr.msra.gmra.mrb[108].mxu1 %vm2490_vm3, %v6452_v62  ;;  %5425 = vmatmul.mubr.msk.bf16.vlgmr.msra.gmra.mrb[100].mxu0 %vm2490_vm3, %v6452_v62 }
 0x12d   :  { %5433 = vmatpush3.bf16.msra.mxu1 %v6507_v55  ;;  %5447 = vmatpush3.bf16.msra.mxu0 %v2435_v8 }
 0x12e   :  { %5434 = vmatprep.subr.bf16.mxu1 %v6538_v27  ;;  %v2439_v41 = vpack.c.bf16 %v2409_v39, %v2408_v21  ;;  %v2438_v42 = vpack.c.bf16 %v2409_v39, %v2409_v39  ;;  %5414 = vmatprep.mubr.msk.bf16.mxu1 %vm2490_vm3, %v6457_v3 }
 0x12f   :  { %v1254_v40 = vpop.f32.mrb[40].mxu0  ;;  %v1306_v43 = vpop.f32.mrb[40].mxu1  ;;  %5428 = vmatprep.mubr.msk.bf16.mxu0 %vm2490_vm3, %v6457_v3 }
 0x130   :  { %v5164_v44 = vpop.f32.mrb[41].mxu0  ;;  %v2362_v45 = vmax.f32 %v1254_v40, %v1306_v43  ;;  %5448 = vmatprep.subr.bf16.mxu0 %v2439_v41  ;;  %v5172_v46 = vpop.f32.mrb[41].mxu1  ;;  %v2981_v53 = vsel %vm2503_vm4, %v2438_v42, 0 }
 0x131   :  { %v1257_v47 = vpop.f32.mrb[42].mxu0  ;;  %5435 = vmatpush3.bf16.msra.mxu1 %v6538_v27  ;;  %5449 = vmatpush3.bf16.msra.mxu0 %v2439_v41  ;;  %v1309_v48 = vpop.f32.mrb[42].mxu1 }
 0x132   :  { %v5165_v49 = vpop.f32.mrb[43].mxu0  ;;  %v2389_v50 = vadd.f32 %v6433_v25, %v2362_v45  ;;  %5649 = vmatprep.subr.msk.bf16.mxu1 %vm2503_vm4, %v2438_v42  ;;  %v5173_v51 = vpop.f32.mrb[43].mxu1 }
 0x134   :  { %v2410_v52 = vmax.f32 %v2389_v50, 0.0  ;;  %5415 = vmatmul.mubr.msk.bf16.gmra.mrb[112].mxu1 %vm2490_vm3, %v6468_v16  ;;  %5429 = vmatmul.mubr.msk.bf16.gmra.mrb[104].mxu0 %vm2490_vm3, %v6468_v16 }
 0x135   :  { %5437 = vmatpush3.bf16.msra.mxu1 %v2981_v53  ;;  %5438 = vmatprep.mubr.msk.bf16.mxu1 %vm2490_vm3, %v6414_v7 }
 0x136   :  { %5460 = vmatprep.subr.bf16.mxu1 %v6538_v27  ;;  %v2440_v55 = vpack.c.bf16 %v2410_v52, %v2410_v52  ;;  %5452 = vmatprep.mubr.msk.bf16.mxu0 %vm2490_vm3, %v6414_v7  ;;  %v6566_v56 = vpack.c.bf16 %v2410_v52, %v2409_v39 }
 0x137   :  { %v1358_v54 = vpop.f32.mrb[44].mxu0  ;;  %v1410_v57 = vpop.f32.mrb[44].mxu1 }
 0x138   :  { %v5180_v58 = vpop.f32.mrb[45].mxu0  ;;  %v2363_v59 = vmax.f32 %v1358_v54, %v1410_v57  ;;  %5650 = vmatprep.subr.msk.bf16.mxu0 %vm2503_vm4, %v2440_v55  ;;  %v3049_v60 = vsel %vm2503_vm4, %v2440_v55, 0  ;;  %v5188_v61 = vpop.f32.mrb[45].mxu1 }
 0x139   :  { %v1361_v63 = vpop.f32.mrb[46].mxu0  ;;  %5451 = vmatpush3.bf16.msra.mxu0 %v3049_v60  ;;  %v1413_v0 = vpop.f32.mrb[46].mxu1 }
 0x13a   :  { %v5181_v1 = vpop.f32.mrb[47].mxu0  ;;  %v2390_v4 = vadd.f32 %v6433_v25, %v2363_v59  ;;  %5474 = vmatprep.subr.bf16.mxu0 %v2439_v41  ;;  %v5189_v5 = vpop.f32.mrb[47].mxu1 }
 0x13c   :  { %v2411_v6 = vmax.f32 %v2390_v4, 0.0  ;;  %5439 = vmatmul.mubr.msk.bf16.vlgmr.msra.gmra.mrb[116].mxu1 %vm2490_vm3, %v6452_v62  ;;  %5453 = vmatmul.mubr.msk.bf16.vlgmr.msra.gmra.mrb[108].mxu0 %vm2490_vm3, %v6452_v62 }
 0x13d   :  { %5461 = vmatpush3.bf16.msra.mxu1 %v6538_v27  ;;  %5475 = vmatpush3.bf16.msra.mxu0 %v2439_v41 }
 0x13e   :  { %5462 = vmatprep.subr.bf16.mxu1 %v6566_v56  ;;  %v2443_v9 = vpack.c.bf16 %v2411_v6, %v2410_v52  ;;  %v2442_v10 = vpack.c.bf16 %v2411_v6, %v2411_v6  ;;  %5442 = vmatprep.mubr.msk.bf16.mxu1 %vm2490_vm3, %v6457_v3 }
 0x13f   :  { %v1462_v8 = vpop.f32.mrb[48].mxu0  ;;  %v1514_v11 = vpop.f32.mrb[48].mxu1  ;;  %5456 = vmatprep.mubr.msk.bf16.mxu0 %vm2490_vm3, %v6457_v3 }
 0x140   :  { %v5196_v13 = vpop.f32.mrb[49].mxu0  ;;  %v2364_v14 = vmax.f32 %v1462_v8, %v1514_v11  ;;  %5476 = vmatprep.subr.bf16.mxu0 %v2443_v9  ;;  %v5204_v15 = vpop.f32.mrb[49].mxu1  ;;  %v3117_v23 = vsel %vm2503_vm4, %v2442_v10, 0 }
 0x141   :  { %v1465_v17 = vpop.f32.mrb[50].mxu0  ;;  %5463 = vmatpush3.bf16.msra.mxu1 %v6566_v56  ;;  %5477 = vmatpush3.bf16.msra.mxu0 %v2443_v9  ;;  %v1517_v18 = vpop.f32.mrb[50].mxu1 }
 0x142   :  { %v5197_v19 = vpop.f32.mrb[51].mxu0  ;;  %v2391_v20 = vadd.f32 %v6433_v25, %v2364_v14  ;;  %5651 = vmatprep.subr.msk.bf16.mxu1 %vm2503_vm4, %v2442_v10  ;;  %v5205_v21 = vpop.f32.mrb[51].mxu1 }
 0x144   :  { %v2412_v22 = vmax.f32 %v2391_v20, 0.0  ;;  %5443 = vmatmul.mubr.msk.bf16.gmra.mrb[120].mxu1 %vm2490_vm3, %v6468_v16  ;;  %5457 = vmatmul.mubr.msk.bf16.gmra.mrb[112].mxu0 %vm2490_vm3, %v6468_v16 }
 0x145   :  { %5465 = vmatpush3.bf16.msra.mxu1 %v3117_v23  ;;  %5466 = vmatprep.mubr.msk.bf16.mxu1 %vm2490_vm3, %v6414_v7 }
 0x146   :  { %5488 = vmatprep.subr.bf16.mxu1 %v6566_v56  ;;  %v2444_v26 = vpack.c.bf16 %v2412_v22, %v2412_v22  ;;  %5480 = vmatprep.mubr.msk.bf16.mxu0 %vm2490_vm3, %v6414_v7  ;;  %v6594_v27 = vpack.c.bf16 %v2412_v22, %v2411_v6 }
 0x147   :  { %v1566_v24 = vpop.f32.mrb[52].mxu0  ;;  %v1618_v28 = vpop.f32.mrb[52].mxu1 }
 0x148   :  { %v5212_v29 = vpop.f32.mrb[53].mxu0  ;;  %v2365_v30 = vmax.f32 %v1566_v24, %v1618_v28  ;;  %5652 = vmatprep.subr.msk.bf16.mxu0 %vm2503_vm4, %v2444_v26  ;;  %v3185_v31 = vsel %vm2503_vm4, %v2444_v26, 0  ;;  %v5220_v32 = vpop.f32.mrb[53].mxu1 }
 0x149   :  { %v1569_v33 = vpop.f32.mrb[54].mxu0  ;;  %5479 = vmatpush3.bf16.msra.mxu0 %v3185_v31  ;;  %v1621_v34 = vpop.f32.mrb[54].mxu1 }
 0x14a   :  { %v5213_v35 = vpop.f32.mrb[55].mxu0  ;;  %v2392_v36 = vadd.f32 %v6433_v25, %v2365_v30  ;;  %5502 = vmatprep.subr.bf16.mxu0 %v2443_v9  ;;  %v5221_v37 = vpop.f32.mrb[55].mxu1 }
 0x14c   :  { %v2413_v38 = vmax.f32 %v2392_v36, 0.0  ;;  %5467 = vmatmul.mubr.msk.bf16.vlgmr.msra.gmra.mrb[124].mxu1 %vm2490_vm3, %v6452_v62  ;;  %5481 = vmatmul.mubr.msk.bf16.vlgmr.msra.gmra.mrb[116].mxu0 %vm2490_vm3, %v6452_v62 }
 0x14d   :  { %5489 = vmatpush3.bf16.msra.mxu1 %v6566_v56  ;;  %5503 = vmatpush3.bf16.msra.mxu0 %v2443_v9 }
 0x14e   :  { %5490 = vmatprep.subr.bf16.mxu1 %v6594_v27  ;;  %v2447_v40 = vpack.c.bf16 %v2413_v38, %v2412_v22  ;;  %v2446_v41 = vpack.c.bf16 %v2413_v38, %v2413_v38  ;;  %5470 = vmatprep.mubr.msk.bf16.mxu1 %vm2490_vm3, %v6457_v3 }
 0x14f   :  { %v1670_v39 = vpop.f32.mrb[56].mxu0  ;;  %v1722_v42 = vpop.f32.mrb[56].mxu1  ;;  %5484 = vmatprep.mubr.msk.bf16.mxu0 %vm2490_vm3, %v6457_v3 }
 0x150   :  { %v5228_v43 = vpop.f32.mrb[57].mxu0  ;;  %v2366_v44 = vmax.f32 %v1670_v39, %v1722_v42  ;;  %5504 = vmatprep.subr.bf16.mxu0 %v2447_v40  ;;  %v5236_v45 = vpop.f32.mrb[57].mxu1  ;;  %v3253_v52 = vsel %vm2503_vm4, %v2446_v41, 0 }
 0x151   :  { %v1673_v46 = vpop.f32.mrb[58].mxu0  ;;  %5491 = vmatpush3.bf16.msra.mxu1 %v6594_v27  ;;  %5505 = vmatpush3.bf16.msra.mxu0 %v2447_v40  ;;  %v1725_v47 = vpop.f32.mrb[58].mxu1 }
 0x152   :  { %v5229_v48 = vpop.f32.mrb[59].mxu0  ;;  %v2393_v49 = vadd.f32 %v6433_v25, %v2366_v44  ;;  %5653 = vmatprep.subr.msk.bf16.mxu1 %vm2503_vm4, %v2446_v41  ;;  %v5237_v50 = vpop.f32.mrb[59].mxu1 }
 0x154   :  { %v2414_v51 = vmax.f32 %v2393_v49, 0.0  ;;  %5471 = vmatmul.mubr.msk.bf16.gmra.mrb[128].mxu1 %vm2490_vm3, %v6468_v16  ;;  %5485 = vmatmul.mubr.msk.bf16.gmra.mrb[120].mxu0 %vm2490_vm3, %v6468_v16 }
 0x155   :  { %5493 = vmatpush3.bf16.msra.mxu1 %v3253_v52  ;;  %5494 = vmatprep.mubr.msk.bf16.mxu1 %vm2490_vm3, %v6414_v7 }
 0x156   :  { %5516 = vmatprep.subr.bf16.mxu1 %v6594_v27  ;;  %v2448_v54 = vpack.c.bf16 %v2414_v51, %v2414_v51  ;;  %5508 = vmatprep.mubr.msk.bf16.mxu0 %vm2490_vm3, %v6414_v7  ;;  %v6622_v55 = vpack.c.bf16 %v2414_v51, %v2413_v38 }
 0x157   :  { %v1774_v53 = vpop.f32.mrb[60].mxu0  ;;  %v1826_v56 = vpop.f32.mrb[60].mxu1 }
 0x158   :  { %v5244_v57 = vpop.f32.mrb[61].mxu0  ;;  %v2367_v58 = vmax.f32 %v1774_v53, %v1826_v56  ;;  %5654 = vmatprep.subr.msk.bf16.mxu0 %vm2503_vm4, %v2448_v54  ;;  %v3321_v59 = vsel %vm2503_vm4, %v2448_v54, 0  ;;  %v5252_v60 = vpop.f32.mrb[61].mxu1 }
 0x159   :  { %v1777_v61 = vpop.f32.mrb[62].mxu0  ;;  %5507 = vmatpush3.bf16.msra.mxu0 %v3321_v59  ;;  %v1829_v63 = vpop.f32.mrb[62].mxu1 }
 0x15a   :  { %v5245_v0 = vpop.f32.mrb[63].mxu0  ;;  %v2394_v1 = vadd.f32 %v6433_v25, %v2367_v58  ;;  %5530 = vmatprep.subr.bf16.mxu0 %v2447_v40  ;;  %v5253_v4 = vpop.f32.mrb[63].mxu1 }
 0x15c   :  { %v2415_v5 = vmax.f32 %v2394_v1, 0.0  ;;  %5495 = vmatmul.mubr.msk.bf16.vlgmr.msra.gmra.mrb[132].mxu1 %vm2490_vm3, %v6452_v62  ;;  %5509 = vmatmul.mubr.msk.bf16.vlgmr.msra.gmra.mrb[124].mxu0 %vm2490_vm3, %v6452_v62 }
 0x15d   :  { %5517 = vmatpush3.bf16.msra.mxu1 %v6594_v27  ;;  %5531 = vmatpush3.bf16.msra.mxu0 %v2447_v40 }
 0x15e   :  { %5518 = vmatprep.subr.bf16.mxu1 %v6622_v55  ;;  %v2451_v8 = vpack.c.bf16 %v2415_v5, %v2414_v51  ;;  %v2450_v9 = vpack.c.bf16 %v2415_v5, %v2415_v5  ;;  %5498 = vmatprep.mubr.msk.bf16.mxu1 %vm2490_vm3, %v6457_v3 }
 0x15f   :  { %v1878_v6 = vpop.f32.mrb[64].mxu0  ;;  %v1930_v10 = vpop.f32.mrb[64].mxu1  ;;  %5512 = vmatprep.mubr.msk.bf16.mxu0 %vm2490_vm3, %v6457_v3 }
 0x160   :  { %v5260_v11 = vpop.f32.mrb[65].mxu0  ;;  %v2368_v13 = vmax.f32 %v1878_v6, %v1930_v10  ;;  %5532 = vmatprep.subr.bf16.mxu0 %v2451_v8  ;;  %v5268_v14 = vpop.f32.mrb[65].mxu1  ;;  %v3389_v22 = vsel %vm2503_vm4, %v2450_v9, 0 }
 0x161   :  { %v1881_v15 = vpop.f32.mrb[66].mxu0  ;;  %5519 = vmatpush3.bf16.msra.mxu1 %v6622_v55  ;;  %5533 = vmatpush3.bf16.msra.mxu0 %v2451_v8  ;;  %v1933_v17 = vpop.f32.mrb[66].mxu1 }
 0x162   :  { %v5261_v18 = vpop.f32.mrb[67].mxu0  ;;  %v2395_v19 = vadd.f32 %v6433_v25, %v2368_v13  ;;  %5655 = vmatprep.subr.msk.bf16.mxu1 %vm2503_vm4, %v2450_v9  ;;  %v5269_v20 = vpop.f32.mrb[67].mxu1 }
 0x164   :  { %v2416_v21 = vmax.f32 %v2395_v19, 0.0  ;;  %5499 = vmatmul.mubr.msk.bf16.gmra.mrb[136].mxu1 %vm2490_vm3, %v6468_v16  ;;  %5513 = vmatmul.mubr.msk.bf16.gmra.mrb[128].mxu0 %vm2490_vm3, %v6468_v16 }
 0x165   :  { %5521 = vmatpush3.bf16.msra.mxu1 %v3389_v22  ;;  %5522 = vmatprep.mubr.msk.bf16.mxu1 %vm2490_vm3, %v6414_v7 }
 0x166   :  { %5544 = vmatprep.subr.bf16.mxu1 %v6622_v55  ;;  %v2452_v24 = vpack.c.bf16 %v2416_v21, %v2416_v21  ;;  %5536 = vmatprep.mubr.msk.bf16.mxu0 %vm2490_vm3, %v6414_v7  ;;  %v6650_v26 = vpack.c.bf16 %v2416_v21, %v2415_v5 }
 0x167   :  { %v1982_v23 = vpop.f32.mrb[68].mxu0  ;;  %v2034_v27 = vpop.f32.mrb[68].mxu1 }
 0x168   :  { %v5276_v28 = vpop.f32.mrb[69].mxu0  ;;  %v2369_v29 = vmax.f32 %v1982_v23, %v2034_v27  ;;  %5656 = vmatprep.subr.msk.bf16.mxu0 %vm2503_vm4, %v2452_v24  ;;  %v3457_v30 = vsel %vm2503_vm4, %v2452_v24, 0  ;;  %v5284_v31 = vpop.f32.mrb[69].mxu1  ;;  %v5758_v24 = vld [vmem:[%s6948_s5 + $0x4] ss:$20 sps:$4 sm:$0xff]  }
 0x169   :  { %v1985_v32 = vpop.f32.mrb[70].mxu0  ;;  %5535 = vmatpush3.bf16.msra.mxu0 %v3457_v30  ;;  %v2037_v33 = vpop.f32.mrb[70].mxu1 }
 0x16a   :  { %v5277_v34 = vpop.f32.mrb[71].mxu0  ;;  %v2396_v35 = vadd.f32 %v6433_v25, %v2369_v29  ;;  %5558 = vmatprep.subr.bf16.mxu0 %v2451_v8  ;;  %v5285_v36 = vpop.f32.mrb[71].mxu1 }
 0x16b   :  { %v6726_v30 = vpop.permute.xlu1 %3959 }
 0x16c   :  { %v2417_v37 = vmax.f32 %v2396_v35, 0.0  ;;  %5523 = vmatmul.mubr.msk.bf16.vlgmr.msra.gmra.mrb[140].mxu1 %vm2490_vm3, %v6452_v62  ;;  %5537 = vmatmul.mubr.msk.bf16.vlgmr.msra.gmra.mrb[132].mxu0 %vm2490_vm3, %v6452_v62 }
 0x16d   :  { %5545 = vmatpush3.bf16.msra.mxu1 %v6622_v55  ;;  %5559 = vmatpush3.bf16.msra.mxu0 %v2451_v8 }
 0x16e   :  { %5546 = vmatprep.subr.bf16.mxu1 %v6650_v26  ;;  %v2455_v39 = vpack.c.bf16 %v2417_v37, %v2416_v21  ;;  %v2454_v40 = vpack.c.bf16 %v2417_v37, %v2417_v37  ;;  %5526 = vmatprep.mubr.msk.bf16.mxu1 %vm2490_vm3, %v6457_v3 }
 0x16f   :  { %v2086_v38 = vpop.f32.mrb[72].mxu0  ;;  %v2138_v41 = vpop.f32.mrb[72].mxu1  ;;  %5540 = vmatprep.mubr.msk.bf16.mxu0 %vm2490_vm3, %v6457_v3 }
 0x170   :  { %v5292_v42 = vpop.f32.mrb[73].mxu0  ;;  %v2370_v43 = vmax.f32 %v2086_v38, %v2138_v41  ;;  %5560 = vmatprep.subr.bf16.mxu0 %v2455_v39  ;;  %v5300_v44 = vpop.f32.mrb[73].mxu1  ;;  %v3525_v51 = vsel %vm2503_vm4, %v2454_v40, 0 }
 0x171   :  { %v2089_v45 = vpop.f32.mrb[74].mxu0  ;;  %5547 = vmatpush3.bf16.msra.mxu1 %v6650_v26  ;;  %5561 = vmatpush3.bf16.msra.mxu0 %v2455_v39  ;;  %v2141_v46 = vpop.f32.mrb[74].mxu1 }
 0x172   :  { %v5293_v47 = vpop.f32.mrb[75].mxu0  ;;  %v2397_v48 = vadd.f32 %v6433_v25, %v2370_v43  ;;  %5657 = vmatprep.subr.msk.bf16.mxu1 %vm2503_vm4, %v2454_v40  ;;  %v5301_v49 = vpop.f32.mrb[75].mxu1 }
 0x173   :  { %v6730_v32 = vpop.permute.xlu1 %3964 }
 0x174   :  { %v2418_v50 = vmax.f32 %v2397_v48, 0.0  ;;  %5527 = vmatmul.mubr.msk.bf16.gmra.mrb[144].mxu1 %vm2490_vm3, %v6468_v16  ;;  %5541 = vmatmul.mubr.msk.bf16.gmra.mrb[136].mxu0 %vm2490_vm3, %v6468_v16 }
 0x175   :  { %5549 = vmatpush3.bf16.msra.mxu1 %v3525_v51  ;;  %5550 = vmatprep.mubr.msk.bf16.mxu1 %vm2490_vm3, %v6414_v7 }
 0x176   :  { %5572 = vmatprep.subr.bf16.mxu1 %v6650_v26  ;;  %v2456_v53 = vpack.c.bf16 %v2418_v50, %v2418_v50  ;;  %5564 = vmatprep.mubr.msk.bf16.mxu0 %vm2490_vm3, %v6414_v7  ;;  %v2457_v54 = vpack.c.bf16 %v2418_v50, %v2417_v37 }
 0x177   :  { %v2190_v52 = vpop.f32.mrb[76].mxu0  ;;  %v2242_v55 = vpop.f32.mrb[76].mxu1 }
 0x178   :  { %v5308_v56 = vpop.f32.mrb[77].mxu0  ;;  %v2371_v57 = vmax.f32 %v2190_v52, %v2242_v55  ;;  %5658 = vmatprep.subr.msk.bf16.mxu0 %vm2503_vm4, %v2456_v53  ;;  %v3593_v58 = vsel %vm2503_vm4, %v2456_v53, 0  ;;  %v5316_v59 = vpop.f32.mrb[77].mxu1 }
 0x179   :  { %v2193_v60 = vpop.f32.mrb[78].mxu0  ;;  %5563 = vmatpush3.bf16.msra.mxu0 %v3593_v58  ;;  %v2245_v61 = vpop.f32.mrb[78].mxu1 }
 0x17a   :  { %v5309_v63 = vpop.f32.mrb[79].mxu0  ;;  %v2398_v0 = vadd.f32 %v6433_v25, %v2371_v57  ;;  %5586 = vmatprep.subr.bf16.mxu0 %v2455_v39  ;;  %v5317_v1 = vpop.f32.mrb[79].mxu1 }
 0x17b   :  { %v6734_v34 = vpop.permute.xlu1 %3974 }
 0x17c   :  { %v2419_v4 = vmax.f32 %v2398_v0, 0.0  ;;  %5551 = vmatmul.mubr.msk.bf16.vlgmr.msra.gmra.mrb[148].mxu1 %vm2490_vm3, %v6452_v62  ;;  %5565 = vmatmul.mubr.msk.bf16.vlgmr.msra.gmra.mrb[140].mxu0 %vm2490_vm3, %v6452_v62 }
 0x17d   :  { %5573 = vmatpush3.bf16.msra.mxu1 %v6650_v26  ;;  %5587 = vmatpush3.bf16.msra.mxu0 %v2455_v39 }
 0x17e   :  { %5574 = vmatprep.subr.bf16.mxu1 %v2457_v54  ;;  %v2459_v6 = vpack.c.bf16 %v2419_v4, %v2418_v50  ;;  %v2458_v8 = vpack.c.bf16 %v2419_v4, %v2419_v4  ;;  %5554 = vmatprep.mubr.msk.bf16.mxu1 %vm2490_vm3, %v6457_v3 }
 0x17f   :  { %v2294_v5 = vpop.f32.mrb[80].mxu0  ;;  %v2346_v9 = vpop.f32.mrb[80].mxu1  ;;  %5568 = vmatprep.mubr.msk.bf16.mxu0 %vm2490_vm3, %v6457_v3 }
 0x180   :  { %v5324_v10 = vpop.f32.mrb[81].mxu0  ;;  %v2372_v11 = vmax.f32 %v2294_v5, %v2346_v9  ;;  %5588 = vmatprep.subr.bf16.mxu0 %v2459_v6  ;;  %v5332_v13 = vpop.f32.mrb[81].mxu1  ;;  %v3661_v21 = vsel %vm2503_vm4, %v2458_v8, 0 }
 0x181   :  { %v2297_v14 = vpop.f32.mrb[82].mxu0  ;;  %5575 = vmatpush3.bf16.msra.mxu1 %v2457_v54  ;;  %5589 = vmatpush3.bf16.msra.mxu0 %v2459_v6  ;;  %v2349_v15 = vpop.f32.mrb[82].mxu1  ;;  %v5761_v6 = vld [vmem:[%s6948_s5 + $0xc] ss:$20 sps:$4 sm:$0xff]  }
 0x182   :  { %v5325_v17 = vpop.f32.mrb[83].mxu0  ;;  %v2399_v18 = vadd.f32 %v6433_v25, %v2372_v11  ;;  %5659 = vmatprep.subr.msk.bf16.mxu1 %vm2503_vm4, %v2458_v8  ;;  %v5333_v19 = vpop.f32.mrb[83].mxu1 }
 0x184   :  { %v2420_v20 = vmax.f32 %v2399_v18, 0.0  ;;  %5555 = vmatmul.mubr.msk.bf16.gmra.mrb[152].mxu1 %vm2490_vm3, %v6468_v16  ;;  %5569 = vmatmul.mubr.msk.bf16.gmra.mrb[144].mxu0 %vm2490_vm3, %v6468_v16 }
 0x185   :  { %5577 = vmatpush3.bf16.msra.mxu1 %v3661_v21  ;;  %5578 = vmatprep.mubr.msk.bf16.mxu1 %vm2490_vm3, %v6414_v7 }
 0x186   :  { %v2460_v22 = vpack.c.bf16 %v2420_v20, %v2420_v20  ;;  %5600 = vmatprep.subr.bf16.mxu1 %v2457_v54  ;;  %v2461_v23 = vpack.c.bf16 %v2420_v20, %v2419_v4  ;;  %5592 = vmatprep.mubr.msk.bf16.mxu0 %vm2490_vm3, %v6414_v7 }
 0x188   :  { %5660 = vmatprep.subr.msk.bf16.mxu0 %vm2503_vm4, %v2460_v22  ;;  %v3729_v25 = vsel %vm2503_vm4, %v2460_v22, 0 }
 0x189   :  { %5591 = vmatpush3.bf16.msra.mxu0 %v3729_v25 }
 0x18c   :  { %5579 = vmatmul.mubr.msk.bf16.vlgmr.msra.gmra.mrb[156].mxu1 %vm2490_vm3, %v6452_v62  ;;  %5593 = vmatmul.mubr.msk.bf16.vlgmr.msra.gmra.mrb[148].mxu0 %vm2490_vm3, %v6452_v62 }
 0x18d   :  { %5601 = vmatpush3.bf16.msra.mxu1 %v2457_v54  ;;  %5582 = vmatprep.mubr.msk.bf16.mxu1 %vm2490_vm3, %v6457_v3  ;;  %v6742_v54 = vpop.permute.xlu1 %3984 }
 0x18e   :  { %5602 = vmatprep.subr.bf16.mxu1 %v2461_v23  ;;  %5596 = vmatprep.mubr.msk.bf16.mxu0 %vm2490_vm3, %v6457_v3 }
 0x191   :  { %5603 = vmatpush3.bf16.msra.mxu1 %v2461_v23 }
 0x194   :  { %5583 = vmatmul.mubr.msk.bf16.gmra.mrb[160].mxu1 %vm2490_vm3, %v6468_v16  ;;  %5597 = vmatmul.mubr.msk.bf16.gmra.mrb[152].mxu0 %vm2490_vm3, %v6468_v16 }
 0x195   :  { %5604 = vmatprep.mubr.msk.bf16.mxu1 %vm2490_vm3, %v6414_v7  ;;  %4268 = vmatprep.mubr.bf16.mxu0 %v5758_v24  ;;  %v6728_v7 = vpop.permute.xlu0 %3954 }
 0x19c   :  { %5605 = vmatmul.mubr.msk.bf16.vlgmr.msra.gmra.mrb[164].mxu1 %vm2490_vm3, %v6452_v62 }
 0x19d   :  { %5608 = vmatprep.mubr.msk.bf16.mxu1 %vm2490_vm3, %v6457_v3 }
 0x1a4   :  { %5609 = vmatmul.mubr.msk.bf16.gmra.mrb[168].mxu1 %vm2490_vm3, %v6468_v16  ;;  %v6732_v16 = vpop.permute.xlu0 %3969 }
 0x1a5   :  { %4309 = vmatprep.mubr.bf16.mxu1 %v5761_v6 }
 0x1a8   :  { %v6739_v50 = vpop.permute.xlu0 %3979 }
 0x1ac   :  { %v6752_v13 = vpop.permute.xlu0 %3989 }
 0x1cf   :  { %v5342_v26 = vpop.f32.mrb[84].mxu1 }
 0x1d0   :  { %v2541_v27 = vpop.f32.mrb[85].mxu1 }
 0x1d1   :  { %v5343_v28 = vpop.f32.mrb[86].mxu1 }
 0x1d2   :  { %v2544_v29 = vpop.f32.mrb[87].mxu1 }
 0x1d7   :  { %v5346_v62 = vpop.f32.mrb[88].mxu1 }
 0x1d8   :  { %v2557_v31 = vpop.f32.mrb[89].mxu1 }
 0x1d9   :  { %v5347_v3 = vpop.f32.mrb[90].mxu1 }
 0x1da   :  { %v2560_v33 = vpop.f32.mrb[91].mxu1 }
 0x1df   :  { %v5356_v35 = vpop.f32.mrb[92].mxu1  ;;  %v5370_v36 = vpop.f32.mrb[84].mxu0 }
 0x1e0   :  { %v3866_v37 = vmax.f32 %v5342_v26, %v5356_v35  ;;  %v2609_v38 = vpop.f32.mrb[93].mxu1  ;;  %v2677_v39 = vpop.f32.mrb[85].mxu0 }
 0x1e1   :  { %v3864_v40 = vmax.f32 %v2541_v27, %v2609_v38  ;;  %v5357_v41 = vpop.f32.mrb[94].mxu1  ;;  %v5371_v42 = vpop.f32.mrb[86].mxu0 }
 0x1e2   :  { %v3867_v43 = vmax.f32 %v5343_v28, %v5357_v41  ;;  %v3994_v44 = vadd.f32 %v6730_v32, %v3866_v37  ;;  %v2612_v45 = vpop.f32.mrb[95].mxu1  ;;  %v2680_v46 = vpop.f32.mrb[87].mxu0 }
 0x1e3   :  { %v3992_v47 = vadd.f32 %v6728_v7, %v3864_v40  ;;  %v3865_v48 = vmax.f32 %v2544_v29, %v2612_v45 }
 0x1e4   :  { %v3995_v49 = vadd.f32 %v6732_v16, %v3867_v43  ;;  %v4074_v52 = vmax.f32 %v3994_v44, 0.0 }
 0x1e5   :  { %v3993_v51 = vadd.f32 %v6726_v30, %v3865_v48  ;;  %v4072_v55 = vmax.f32 %v3992_v47, 0.0 }
 0x1e6   :  { %v4075_v53 = vmax.f32 %v3995_v49, 0.0 }
 0x1e7   :  { %v4073_v56 = vmax.f32 %v3993_v51, 0.0  ;;  %v5360_v57 = vpop.f32.mrb[96].mxu1  ;;  %v5374_v58 = vpop.f32.mrb[88].mxu0 }
 0x1e8   :  { %v6744_v59 = vpack.c.bf16 %v4075_v53, %v4074_v52  ;;  %v3870_v60 = vmax.f32 %v5346_v62, %v5360_v57  ;;  %v2625_v61 = vpop.f32.mrb[97].mxu1  ;;  %v2693_v63 = vpop.f32.mrb[89].mxu0 }
 0x1e9   :  { %v6746_v0 = vpack.c.bf16 %v4073_v56, %v4072_v55  ;;  %v3868_v1 = vmax.f32 %v2557_v31, %v2625_v61  ;;  %v5361_v4 = vpop.f32.mrb[98].mxu1  ;;  %v5375_v5 = vpop.f32.mrb[90].mxu0 }
 0x1ea   :  { %v3871_v8 = vmax.f32 %v5347_v3, %v5361_v4  ;;  %v3998_v9 = vadd.f32 %v6742_v54, %v3870_v60  ;;  %v2628_v10 = vpop.f32.mrb[99].mxu1  ;;  %v2696_v11 = vpop.f32.mrb[91].mxu0 }
 0x1eb   :  { %v3996_v14 = vadd.f32 %v6734_v34, %v3868_v1  ;;  %v3869_v15 = vmax.f32 %v2560_v33, %v2628_v10 }
 0x1ec   :  { %v3999_v17 = vadd.f32 %v6752_v13, %v3871_v8  ;;  %v4078_v19 = vmax.f32 %v3998_v9, 0.0 }
 0x1ed   :  { %v3997_v18 = vadd.f32 %v6739_v50, %v3869_v15  ;;  %v4076_v21 = vmax.f32 %v3996_v14, 0.0 }
 0x1ee   :  { %v4079_v20 = vmax.f32 %v3999_v17, 0.0 }
 0x1ef   :  { %v4077_v22 = vmax.f32 %v3997_v18, 0.0  ;;  %v5384_v23 = vpop.f32.mrb[100].mxu1  ;;  %v5398_v25 = vpop.f32.mrb[92].mxu0 }
 0x1f0   :  { %v6757_v24 = vpack.c.bf16 %v4079_v20, %v4078_v19  ;;  %v3874_v26 = vmax.f32 %v5370_v36, %v5384_v23  ;;  %v2745_v27 = vpop.f32.mrb[101].mxu1  ;;  %v2813_v28 = vpop.f32.mrb[93].mxu0 }
 0x1f1   :  { %v6759_v29 = vpack.c.bf16 %v4077_v22, %v4076_v21  ;;  %v3872_v62 = vmax.f32 %v2677_v39, %v2745_v27  ;;  %v5385_v31 = vpop.f32.mrb[102].mxu1  ;;  %v5399_v3 = vpop.f32.mrb[94].mxu0 }
 0x1f2   :  { %v4002_v33 = vadd.f32 %v6730_v32, %v3874_v26  ;;  %v3875_v35 = vmax.f32 %v5371_v42, %v5385_v31  ;;  %v2748_v37 = vpop.f32.mrb[103].mxu1  ;;  %v2816_v38 = vpop.f32.mrb[95].mxu0 }
 0x1f3   :  { %v4000_v40 = vadd.f32 %v6728_v7, %v3872_v62  ;;  %v3873_v41 = vmax.f32 %v2680_v46, %v2748_v37 }
 0x1f4   :  { %v4003_v43 = vadd.f32 %v6732_v16, %v3875_v35  ;;  %v4082_v36 = vmax.f32 %v4002_v33, 0.0 }
 0x1f5   :  { %v4001_v44 = vadd.f32 %v6726_v30, %v3873_v41  ;;  %v4080_v47 = vmax.f32 %v4000_v40, 0.0 }
 0x1f6   :  { %v4083_v45 = vmax.f32 %v4003_v43, 0.0 }
 0x1f7   :  { %v4081_v48 = vmax.f32 %v4001_v44, 0.0  ;;  %v5388_v49 = vpop.f32.mrb[104].mxu1  ;;  %v5402_v39 = vpop.f32.mrb[96].mxu0 }
 0x1f8   :  { %v6765_v51 = vpack.c.bf16 %v4083_v45, %v4082_v36  ;;  %v3878_v52 = vmax.f32 %v5374_v58, %v5388_v49  ;;  %v2761_v53 = vpop.f32.mrb[105].mxu1  ;;  %v2829_v42 = vpop.f32.mrb[97].mxu0 }
 0x1f9   :  { %v6767_v55 = vpack.c.bf16 %v4081_v48, %v4080_v47  ;;  %v3876_v56 = vmax.f32 %v2693_v63, %v2761_v53  ;;  %v5389_v57 = vpop.f32.mrb[106].mxu1  ;;  %v5403_v46 = vpop.f32.mrb[98].mxu0 }
 0x1fa   :  { %v4006_v60 = vadd.f32 %v6742_v54, %v3878_v52  ;;  %v3879_v61 = vmax.f32 %v5375_v5, %v5389_v57  ;;  %v2764_v1 = vpop.f32.mrb[107].mxu1  ;;  %v2832_v4 = vpop.f32.mrb[99].mxu0 }
 0x1fb   :  { %v4004_v6 = vadd.f32 %v6734_v34, %v3876_v56  ;;  %v3877_v8 = vmax.f32 %v2696_v11, %v2764_v1 }
 0x1fc   :  { %v4007_v9 = vadd.f32 %v6752_v13, %v3879_v61  ;;  %v4086_v58 = vmax.f32 %v4006_v60, 0.0 }
 0x1fd   :  { %v4005_v10 = vadd.f32 %v6739_v50, %v3877_v8  ;;  %v4084_v15 = vmax.f32 %v4004_v6, 0.0 }
 0x1fe   :  { %v4087_v14 = vmax.f32 %v4007_v9, 0.0 }
 0x1ff   :  { %v4085_v17 = vmax.f32 %v4005_v10, 0.0  ;;  %v5412_v18 = vpop.f32.mrb[108].mxu1  ;;  %v5426_v63 = vpop.f32.mrb[100].mxu0 }
 0x200   :  { %v6773_v19 = vpack.c.bf16 %v4087_v14, %v4086_v58  ;;  %v3882_v20 = vmax.f32 %v5398_v25, %v5412_v18  ;;  %v2881_v21 = vpop.f32.mrb[109].mxu1  ;;  %v2949_v5 = vpop.f32.mrb[101].mxu0 }
 0x201   :  { %v6775_v22 = vpack.c.bf16 %v4085_v17, %v4084_v15  ;;  %v3880_v23 = vmax.f32 %v2813_v28, %v2881_v21  ;;  %v5413_v26 = vpop.f32.mrb[110].mxu1  ;;  %v5427_v11 = vpop.f32.mrb[102].mxu0 }
 0x202   :  { %v4010_v27 = vadd.f32 %v6730_v32, %v3882_v20  ;;  %v3883_v62 = vmax.f32 %v5399_v3, %v5413_v26  ;;  %v2884_v31 = vpop.f32.mrb[111].mxu1  ;;  %v2952_v33 = vpop.f32.mrb[103].mxu0 }
 0x203   :  { %v4008_v35 = vadd.f32 %v6728_v7, %v3880_v23  ;;  %v3881_v37 = vmax.f32 %v2816_v38, %v2884_v31 }
 0x204   :  { %v4011_v40 = vadd.f32 %v6732_v16, %v3883_v62  ;;  %v4090_v25 = vmax.f32 %v4010_v27, 0.0 }
 0x205   :  { %v4009_v41 = vadd.f32 %v6726_v30, %v3881_v37  ;;  %v4088_v44 = vmax.f32 %v4008_v35, 0.0 }
 0x206   :  { %v4091_v43 = vmax.f32 %v4011_v40, 0.0 }
 0x207   :  { %v4089_v36 = vmax.f32 %v4009_v41, 0.0  ;;  %v5416_v45 = vpop.f32.mrb[112].mxu1  ;;  %v5430_v28 = vpop.f32.mrb[104].mxu0 }
 0x208   :  { %v3886_v47 = vmax.f32 %v5402_v39, %v5416_v45  ;;  %v2897_v48 = vpop.f32.mrb[113].mxu1  ;;  %v4161_v49 = vpack.c.bf16 %v4091_v43, %v4090_v25  ;;  %v2965_v52 = vpop.f32.mrb[105].mxu0 }
 0x209   :  { %v3884_v3 = vmax.f32 %v2829_v42, %v2897_v48  ;;  %v5417_v53 = vpop.f32.mrb[114].mxu1  ;;  %v4160_v56 = vpack.c.bf16 %v4089_v36, %v4088_v44  ;;  %v5431_v57 = vpop.f32.mrb[106].mxu0 }
 0x20a   :  { %v4014_v38 = vadd.f32 %v6742_v54, %v3886_v47  ;;  %v3887_v60 = vmax.f32 %v5403_v46, %v5417_v53  ;;  %v2900_v61 = vpop.f32.mrb[115].mxu1  ;;  %v2968_v1 = vpop.f32.mrb[107].mxu0 }
 0x20b   :  { %v4012_v6 = vadd.f32 %v6734_v34, %v3884_v3  ;;  %v3885_v8 = vmax.f32 %v2832_v4, %v2900_v61  ;;  %4942 = vmatprep.subr.bf16.mxu0 %v4160_v56 }
 0x20c   :  { %v4015_v9 = vadd.f32 %v6752_v13, %v3887_v60  ;;  %4943 = vmatpush3.bf16.msra.mxu0 %v6746_v0  ;;  %v4094_v42 = vmax.f32 %v4014_v38, 0.0 }
 0x20d   :  { %v4013_v39 = vadd.f32 %v6739_v50, %v3885_v8  ;;  %4944 = vmatprep.subr.bf16.mxu0 %v4161_v49  ;;  %v4092_v58 = vmax.f32 %v4012_v6, 0.0 }
 0x20e   :  { %v4095_v10 = vmax.f32 %v4015_v9, 0.0 }
 0x20f   :  { %v4093_v14 = vmax.f32 %v4013_v39, 0.0  ;;  %v5440_v15 = vpop.f32.mrb[116].mxu1  ;;  %v6786_v17 = vpop.f32.mrb[108].mxu0 }
 0x210   :  { %v3890_v46 = vmax.f32 %v5426_v63, %v5440_v15  ;;  %v3017_v18 = vpop.f32.mrb[117].mxu1  ;;  %4945 = vmatpush3.bf16.msra.mxu0 %v6744_v59  ;;  %v4163_v4 = vpack.c.bf16 %v4095_v10, %v4094_v42  ;;  %v3085_v20 = vpop.f32.mrb[109].mxu0 }
 0x211   :  { %v3888_v21 = vmax.f32 %v2949_v5, %v3017_v18  ;;  %v5441_v23 = vpop.f32.mrb[118].mxu1  ;;  %v4162_v26 = vpack.c.bf16 %v4093_v14, %v4092_v58  ;;  %v5455_v0 = vpop.f32.mrb[110].mxu0 }
 0x212   :  { %v4018_v27 = vadd.f32 %v6730_v32, %v3890_v46  ;;  %v3891_v62 = vmax.f32 %v5427_v11, %v5441_v23  ;;  %v3020_v31 = vpop.f32.mrb[119].mxu1  ;;  %v3088_v35 = vpop.f32.mrb[111].mxu0 }
 0x213   :  { %v4016_v37 = vadd.f32 %v6728_v7, %v3888_v21  ;;  %v3889_v40 = vmax.f32 %v2952_v33, %v3020_v31  ;;  %4946 = vmatprep.subr.bf16.mxu0 %v4162_v26 }
 0x214   :  { %v4019_v63 = vadd.f32 %v6732_v16, %v3891_v62  ;;  %4947 = vmatpush3.bf16.msra.mxu0 %v6759_v29  ;;  %v4098_v5 = vmax.f32 %v4018_v27, 0.0 }
 0x215   :  { %v4017_v59 = vadd.f32 %v6726_v30, %v3889_v40  ;;  %4948 = vmatprep.subr.bf16.mxu0 %v4163_v4  ;;  %v4096_v25 = vmax.f32 %v4016_v37, 0.0 }
 0x216   :  { %v4099_v41 = vmax.f32 %v4019_v63, 0.0 }
 0x217   :  { %v4097_v43 = vmax.f32 %v4017_v59, 0.0  ;;  %v5444_v44 = vpop.f32.mrb[120].mxu1  ;;  %v6794_v36 = vpop.f32.mrb[112].mxu0 }
 0x218   :  { %v3894_v11 = vmax.f32 %v5430_v28, %v5444_v44  ;;  %v3033_v45 = vpop.f32.mrb[121].mxu1  ;;  %4949 = vmatpush3.bf16.msra.mxu0 %v6757_v24  ;;  %v4165_v33 = vpack.c.bf16 %v4099_v41, %v4098_v5  ;;  %v6797_v47 = vpop.f32.mrb[113].mxu0 }
 0x219   :  { %v3892_v48 = vmax.f32 %v2965_v52, %v3033_v45  ;;  %v5445_v49 = vpop.f32.mrb[122].mxu1  ;;  %v4164_v29 = vpack.c.bf16 %v4097_v43, %v4096_v25  ;;  %v6799_v3 = vpop.f32.mrb[114].mxu0 }
 0x21a   :  { %v4022_v53 = vadd.f32 %v6742_v54, %v3894_v11  ;;  %v3895_v56 = vmax.f32 %v5431_v57, %v5445_v49  ;;  %v3036_v38 = vpop.f32.mrb[123].mxu1  ;;  %v3104_v60 = vpop.f32.mrb[115].mxu0 }
 0x21b   :  { %v4020_v61 = vadd.f32 %v6734_v34, %v3892_v48  ;;  %v3893_v6 = vmax.f32 %v2968_v1, %v3036_v38  ;;  %4950 = vmatprep.subr.bf16.mxu0 %v4164_v29 }
 0x21c   :  { %v4023_v28 = vadd.f32 %v6752_v13, %v3895_v56  ;;  %4951 = vmatpush3.bf16.msra.mxu0 %v6767_v55  ;;  %v4102_v52 = vmax.f32 %v4022_v53, 0.0 }
 0x21d   :  { %v4021_v24 = vadd.f32 %v6739_v50, %v3893_v6  ;;  %4952 = vmatprep.subr.bf16.mxu0 %v4165_v33  ;;  %v4100_v9 = vmax.f32 %v4020_v61, 0.0 }
 0x21e   :  { %v4103_v8 = vmax.f32 %v4023_v28, 0.0 }
 0x21f   :  { %v4101_v39 = vmax.f32 %v4021_v24, 0.0  ;;  %v5468_v42 = vpop.f32.mrb[124].mxu1  ;;  %v6806_v10 = vpop.f32.mrb[116].mxu0 }
 0x220   :  { %v3898_v57 = vmax.f32 %v6786_v17, %v5468_v42  ;;  %v3153_v58 = vpop.f32.mrb[125].mxu1  ;;  %4953 = vmatpush3.bf16.msra.mxu0 %v6765_v51  ;;  %v4167_v1 = vpack.c.bf16 %v4103_v8, %v4102_v52  ;;  %v3221_v14 = vpop.f32.mrb[117].mxu0 }
 0x221   :  { %v3896_v15 = vmax.f32 %v3085_v20, %v3153_v58  ;;  %v5469_v46 = vpop.f32.mrb[126].mxu1  ;;  %v4166_v55 = vpack.c.bf16 %v4101_v39, %v4100_v9  ;;  %v5483_v18 = vpop.f32.mrb[118].mxu0 }
 0x222   :  { %v4026_v4 = vadd.f32 %v6730_v32, %v3898_v57  ;;  %v3899_v21 = vmax.f32 %v5455_v0, %v5469_v46  ;;  %v3156_v23 = vpop.f32.mrb[127].mxu1  ;;  %v3224_v26 = vpop.f32.mrb[119].mxu0  ;;  %v5756_v0 = vld [vmem:[%s6948_s5] ss:$20 sps:$4 sm:$0xff]  }
 0x223   :  { %v4024_v27 = vadd.f32 %v6728_v7, %v3896_v15  ;;  %v3897_v62 = vmax.f32 %v3088_v35, %v3156_v23  ;;  %4954 = vmatprep.subr.bf16.mxu0 %v4166_v55 }
 0x224   :  { %v4027_v17 = vadd.f32 %v6732_v16, %v3899_v21  ;;  %4955 = vmatpush3.bf16.msra.mxu0 %v6775_v22  ;;  %v4106_v20 = vmax.f32 %v4026_v4, 0.0 }
 0x225   :  { %v4025_v51 = vadd.f32 %v6726_v30, %v3897_v62  ;;  %4956 = vmatprep.subr.bf16.mxu0 %v4167_v1  ;;  %v4104_v37 = vmax.f32 %v4024_v27, 0.0 }
 0x226   :  { %v4107_v31 = vmax.f32 %v4027_v17, 0.0 }
 0x227   :  { %v4105_v40 = vmax.f32 %v4025_v51, 0.0  ;;  %v5472_v63 = vpop.f32.mrb[128].mxu1  ;;  %v5486_v59 = vpop.f32.mrb[120].mxu0 }
 0x228   :  { %v6818_v5 = vpack.c.bf16 %v4107_v31, %v4106_v20  ;;  %v3902_v35 = vmax.f32 %v6794_v36, %v5472_v63  ;;  %v3169_v41 = vpop.f32.mrb[129].mxu1  ;;  %4957 = vmatpush3.bf16.msra.mxu0 %v6773_v19  ;;  %v3237_v22 = vpop.f32.mrb[121].mxu0 }
 0x229   :  { %v6822_v25 = vpack.c.bf16 %v4105_v40, %v4104_v37  ;;  %v3900_v43 = vmax.f32 %v6797_v47, %v3169_v41  ;;  %v5473_v44 = vpop.f32.mrb[130].mxu1  ;;  %v5487_v11 = vpop.f32.mrb[122].mxu0  ;;  %5612 = vmatprep.subr.bf16.mxu0 %v5788_v2 }
 0x22a   :  { %v4030_v45 = vadd.f32 %v6742_v54, %v3902_v35  ;;  %v3903_v33 = vmax.f32 %v6799_v3, %v5473_v44  ;;  %v3172_v48 = vpop.f32.mrb[131].mxu1  ;;  %v3240_v49 = vpop.f32.mrb[123].mxu0 }
 0x22b   :  { %v4028_v36 = vadd.f32 %v6734_v34, %v3900_v43  ;;  %v3901_v29 = vmax.f32 %v3104_v60, %v3172_v48  ;;  %4269 = vmatmul.mubr.bf16.vlgmr.msra.gmra.mrb[156].mxu0 %v5756_v0 }
 0x22c   :  { %v4031_v19 = vadd.f32 %v6752_v13, %v3903_v33  ;;  %5628 = vmatprep.mubr.msk.bf16.mxu0 %vm5789_vm2, %v5788_v2  ;;  %v4110_v53 = vmax.f32 %v4030_v45, 0.0 }
 0x22d   :  { %v4029_v47 = vadd.f32 %v6739_v50, %v3901_v29  ;;  %v4108_v38 = vmax.f32 %v4028_v36, 0.0 }
 0x22e   :  { %v4111_v56 = vmax.f32 %v4031_v19, 0.0 }
 0x22f   :  { %v4109_v61 = vmax.f32 %v4029_v47, 0.0  ;;  %v5496_v6 = vpop.f32.mrb[132].mxu1  ;;  %v5510_v28 = vpop.f32.mrb[124].mxu0 }
 0x230   :  { %v6833_v3 = vpack.c.bf16 %v4111_v56, %v4110_v53  ;;  %v3906_v24 = vmax.f32 %v6806_v10, %v5496_v6  ;;  %v3289_v52 = vpop.f32.mrb[133].mxu1  ;;  %v3357_v60 = vpop.f32.mrb[125].mxu0 }
 0x231   :  { %v6836_v8 = vpack.c.bf16 %v4109_v61, %v4108_v38  ;;  %v3904_v9 = vmax.f32 %v3221_v14, %v3289_v52  ;;  %v5497_v39 = vpop.f32.mrb[134].mxu1  ;;  %v5511_v42 = vpop.f32.mrb[126].mxu0 }
 0x232   :  { %v4034_v57 = vadd.f32 %v6730_v32, %v3906_v24  ;;  %v3907_v58 = vmax.f32 %v5483_v18, %v5497_v39  ;;  %v3292_v1 = vpop.f32.mrb[135].mxu1  ;;  %v3360_v15 = vpop.f32.mrb[127].mxu0 }
 0x233   :  { %v4032_v46 = vadd.f32 %v6728_v7, %v3904_v9  ;;  %v3905_v55 = vmax.f32 %v3224_v26, %v3292_v1 }
 0x234   :  { %v4035_v4 = vadd.f32 %v6732_v16, %v3907_v58  ;;  %v4114_v10 = vmax.f32 %v4034_v57, 0.0 }
 0x235   :  { %v4033_v21 = vadd.f32 %v6726_v30, %v3905_v55  ;;  %v4112_v27 = vmax.f32 %v4032_v46, 0.0 }
 0x236   :  { %v4115_v23 = vmax.f32 %v4035_v4, 0.0 }
 0x237   :  { %v4113_v62 = vmax.f32 %v4033_v21, 0.0  ;;  %v5500_v17 = vpop.f32.mrb[136].mxu1  ;;  %v5514_v14 = vpop.f32.mrb[128].mxu0 }
 0x238   :  { %v6842_v51 = vpack.c.bf16 %v4115_v23, %v4114_v10  ;;  %v3910_v20 = vmax.f32 %v5486_v59, %v5500_v17  ;;  %v3305_v31 = vpop.f32.mrb[137].mxu1  ;;  %v3373_v18 = vpop.f32.mrb[129].mxu0 }
 0x239   :  { %v6844_v37 = vpack.c.bf16 %v4113_v62, %v4112_v27  ;;  %v3908_v40 = vmax.f32 %v3237_v22, %v3305_v31  ;;  %v5501_v63 = vpop.f32.mrb[138].mxu1  ;;  %v5515_v26 = vpop.f32.mrb[130].mxu0 }
 0x23a   :  { %v4038_v0 = vadd.f32 %v6742_v54, %v3910_v20  ;;  %v3911_v35 = vmax.f32 %v5487_v11, %v5501_v63  ;;  %v3308_v41 = vpop.f32.mrb[139].mxu1  ;;  %v3376_v43 = vpop.f32.mrb[131].mxu0 }
 0x23b   :  { %v4036_v44 = vadd.f32 %v6734_v34, %v3908_v40  ;;  %v3909_v45 = vmax.f32 %v3240_v49, %v3308_v41 }
 0x23c   :  { %v4039_v33 = vadd.f32 %v6752_v13, %v3911_v35  ;;  %v4118_v59 = vmax.f32 %v4038_v0, 0.0 }
 0x23d   :  { %v4037_v48 = vadd.f32 %v6739_v50, %v3909_v45  ;;  %v4116_v29 = vmax.f32 %v4036_v44, 0.0 }
 0x23e   :  { %v4119_v36 = vmax.f32 %v4039_v33, 0.0 }
 0x23f   :  { %v4117_v19 = vmax.f32 %v4037_v48, 0.0  ;;  %v5524_v47 = vpop.f32.mrb[140].mxu1  ;;  %v5538_v22 = vpop.f32.mrb[132].mxu0 }
 0x240   :  { %v6850_v53 = vpack.c.bf16 %v4119_v36, %v4118_v59  ;;  %v3914_v56 = vmax.f32 %v5510_v28, %v5524_v47  ;;  %v3425_v38 = vpop.f32.mrb[141].mxu1  ;;  %v3493_v11 = vpop.f32.mrb[133].mxu0 }
 0x241   :  { %v6852_v61 = vpack.c.bf16 %v4117_v19, %v4116_v29  ;;  %v3912_v6 = vmax.f32 %v3357_v60, %v3425_v38  ;;  %v5525_v24 = vpop.f32.mrb[142].mxu1  ;;  %v5539_v49 = vpop.f32.mrb[134].mxu0 }
 0x242   :  { %v4042_v52 = vadd.f32 %v6730_v32, %v3914_v56  ;;  %v3915_v9 = vmax.f32 %v5511_v42, %v5525_v24  ;;  %v3428_v39 = vpop.f32.mrb[143].mxu1  ;;  %v3496_v57 = vpop.f32.mrb[135].mxu0 }
 0x243   :  { %v4040_v58 = vadd.f32 %v6728_v7, %v3912_v6  ;;  %v3913_v1 = vmax.f32 %v3360_v15, %v3428_v39 }
 0x244   :  { %v4043_v46 = vadd.f32 %v6732_v16, %v3915_v9  ;;  %v4122_v28 = vmax.f32 %v4042_v52, 0.0 }
 0x245   :  { %v4041_v55 = vadd.f32 %v6726_v30, %v3913_v1  ;;  %v4120_v21 = vmax.f32 %v4040_v58, 0.0 }
 0x246   :  { %v4123_v4 = vmax.f32 %v4043_v46, 0.0 }
 0x247   :  { %v4121_v10 = vmax.f32 %v4041_v55, 0.0  ;;  %v5528_v23 = vpop.f32.mrb[144].mxu1  ;;  %v5542_v60 = vpop.f32.mrb[136].mxu0 }
 0x248   :  { %v3918_v27 = vmax.f32 %v5514_v14, %v5528_v23  ;;  %v3441_v62 = vpop.f32.mrb[145].mxu1  ;;  %v4177_v17 = vpack.c.bf16 %v4123_v4, %v4122_v28  ;;  %v3509_v20 = vpop.f32.mrb[137].mxu0 }
 0x249   :  { %v3916_v42 = vmax.f32 %v3373_v18, %v3441_v62  ;;  %v5529_v31 = vpop.f32.mrb[146].mxu1  ;;  %v4176_v40 = vpack.c.bf16 %v4121_v10, %v4120_v21  ;;  %v5543_v63 = vpop.f32.mrb[138].mxu0 }
 0x24a   :  { %v4046_v15 = vadd.f32 %v6742_v54, %v3918_v27  ;;  %v3919_v0 = vmax.f32 %v5515_v26, %v5529_v31  ;;  %v3444_v35 = vpop.f32.mrb[147].mxu1  ;;  %v3512_v41 = vpop.f32.mrb[139].mxu0 }
 0x24b   :  { %v4044_v44 = vadd.f32 %v6734_v34, %v3916_v42  ;;  %v3917_v45 = vmax.f32 %v3376_v43, %v3444_v35  ;;  %4964 = vmatprep.subr.bf16.mxu1 %v4176_v40 }
 0x24c   :  { %v4047_v33 = vadd.f32 %v6752_v13, %v3919_v0  ;;  %4965 = vmatpush3.bf16.msra.mxu1 %v6822_v25  ;;  %v4126_v18 = vmax.f32 %v4046_v15, 0.0 }
 0x24d   :  { %v4045_v14 = vadd.f32 %v6739_v50, %v3917_v45  ;;  %4966 = vmatprep.subr.bf16.mxu1 %v4177_v17  ;;  %v4124_v59 = vmax.f32 %v4044_v44, 0.0 }
 0x24e   :  { %v4127_v48 = vmax.f32 %v4047_v33, 0.0 }
 0x24f   :  { %v4125_v36 = vmax.f32 %v4045_v14, 0.0  ;;  %v5552_v29 = vpop.f32.mrb[148].mxu1  ;;  %v6863_v19 = vpop.f32.mrb[140].mxu0 }
 0x250   :  { %v3922_v26 = vmax.f32 %v5538_v22, %v5552_v29  ;;  %v3561_v47 = vpop.f32.mrb[149].mxu1  ;;  %4967 = vmatpush3.bf16.msra.mxu1 %v6818_v5  ;;  %v4179_v43 = vpack.c.bf16 %v4127_v48, %v4126_v18  ;;  %v3629_v56 = vpop.f32.mrb[141].mxu0 }
 0x251   :  { %v3920_v38 = vmax.f32 %v3493_v11, %v3561_v47  ;;  %v5553_v6 = vpop.f32.mrb[150].mxu1  ;;  %v4178_v24 = vpack.c.bf16 %v4125_v36, %v4124_v59  ;;  %v5567_v25 = vpop.f32.mrb[142].mxu0 }
 0x252   :  { %v4050_v52 = vadd.f32 %v6730_v32, %v3922_v26  ;;  %v3923_v9 = vmax.f32 %v5539_v49, %v5553_v6  ;;  %v3564_v39 = vpop.f32.mrb[151].mxu1  ;;  %v3632_v58 = vpop.f32.mrb[143].mxu0 }
 0x253   :  { %v4048_v1 = vadd.f32 %v6728_v7, %v3920_v38  ;;  %v3921_v46 = vmax.f32 %v3496_v57, %v3564_v39  ;;  %4968 = vmatprep.subr.bf16.mxu1 %v4178_v24 }
 0x254   :  { %v4051_v22 = vadd.f32 %v6732_v16, %v3923_v9  ;;  %4969 = vmatpush3.bf16.msra.mxu1 %v6836_v8  ;;  %v4130_v11 = vmax.f32 %v4050_v52, 0.0 }
 0x255   :  { %v4049_v5 = vadd.f32 %v6726_v30, %v3921_v46  ;;  %4970 = vmatprep.subr.bf16.mxu1 %v4179_v43  ;;  %v4128_v28 = vmax.f32 %v4048_v1, 0.0 }
 0x256   :  { %v4131_v55 = vmax.f32 %v4051_v22, 0.0 }
 0x257   :  { %v4129_v4 = vmax.f32 %v4049_v5, 0.0  ;;  %v5556_v21 = vpop.f32.mrb[152].mxu1  ;;  %v6871_v10 = vpop.f32.mrb[144].mxu0 }
 0x258   :  { %v3926_v49 = vmax.f32 %v5542_v60, %v5556_v21  ;;  %v3577_v23 = vpop.f32.mrb[153].mxu1  ;;  %4971 = vmatpush3.bf16.msra.mxu1 %v6833_v3  ;;  %v4181_v57 = vpack.c.bf16 %v4131_v55, %v4130_v11  ;;  %v6874_v27 = vpop.f32.mrb[145].mxu0 }
 0x259   :  { %v3924_v62 = vmax.f32 %v3509_v20, %v3577_v23  ;;  %v5557_v17 = vpop.f32.mrb[154].mxu1  ;;  %v4180_v8 = vpack.c.bf16 %v4129_v4, %v4128_v28  ;;  %v6876_v42 = vpop.f32.mrb[146].mxu0 }
 0x25a   :  { %v4054_v31 = vadd.f32 %v6742_v54, %v3926_v49  ;;  %v3927_v40 = vmax.f32 %v5543_v63, %v5557_v17  ;;  %v3580_v15 = vpop.f32.mrb[155].mxu1  ;;  %v6879_v0 = vpop.f32.mrb[147].mxu0 }
 0x25b   :  { %v4052_v35 = vadd.f32 %v6734_v34, %v3924_v62  ;;  %v3925_v60 = vmax.f32 %v3512_v41, %v3580_v15  ;;  %4972 = vmatprep.subr.bf16.mxu1 %v4180_v8 }
 0x25c   :  { %v4055_v3 = vadd.f32 %v6752_v13, %v3927_v40  ;;  %4973 = vmatpush3.bf16.msra.mxu1 %v6844_v37  ;;  %v4134_v44 = vmax.f32 %v4054_v31, 0.0 }
 0x25d   :  { %v4053_v20 = vadd.f32 %v6739_v50, %v3925_v60  ;;  %4974 = vmatprep.subr.bf16.mxu1 %v4181_v57  ;;  %v4132_v33 = vmax.f32 %v4052_v35, 0.0 }
 0x25e   :  { %v4135_v45 = vmax.f32 %v4055_v3, 0.0 }
 0x25f   :  { %v4133_v14 = vmax.f32 %v4053_v20, 0.0  ;;  %v5580_v18 = vpop.f32.mrb[156].mxu1  ;;  %v6885_v63 = vpop.f32.mrb[148].mxu0 }
 0x260   :  { %v3930_v48 = vmax.f32 %v6863_v19, %v5580_v18  ;;  %v3697_v59 = vpop.f32.mrb[157].mxu1  ;;  %4975 = vmatpush3.bf16.msra.mxu1 %v6842_v51  ;;  %v4183_v41 = vpack.c.bf16 %v4135_v45, %v4134_v44  ;;  %v3765_v36 = vpop.f32.mrb[149].mxu0 }
 0x261   :  { %v3928_v29 = vmax.f32 %v3629_v56, %v3697_v59  ;;  %v5581_v26 = vpop.f32.mrb[158].mxu1  ;;  %v4182_v37 = vpack.c.bf16 %v4133_v14, %v4132_v33  ;;  %v5595_v47 = vpop.f32.mrb[150].mxu0 }
 0x262   :  { %v4058_v43 = vadd.f32 %v6730_v32, %v3930_v48  ;;  %v3931_v38 = vmax.f32 %v5567_v25, %v5581_v26  ;;  %v3700_v6 = vpop.f32.mrb[159].mxu1  ;;  %v3768_v24 = vpop.f32.mrb[151].mxu0  ;;  %v5759_v25 = vld [vmem:[%s6948_s5 + $0x8] ss:$20 sps:$4 sm:$0xff]  }
 0x263   :  { %v4056_v52 = vadd.f32 %v6728_v7, %v3928_v29  ;;  %v3929_v9 = vmax.f32 %v3632_v58, %v3700_v6  ;;  %4976 = vmatprep.subr.bf16.mxu1 %v4182_v37 }
 0x264   :  { %v4059_v19 = vadd.f32 %v6732_v16, %v3931_v38  ;;  %4977 = vmatpush3.bf16.msra.mxu1 %v6852_v61  ;;  %v4138_v56 = vmax.f32 %v4058_v43, 0.0 }
 0x265   :  { %v4057_v51 = vadd.f32 %v6726_v30, %v3929_v9  ;;  %4978 = vmatprep.subr.bf16.mxu1 %v4183_v41  ;;  %v4136_v1 = vmax.f32 %v4056_v52, 0.0 }
 0x266   :  { %v4139_v39 = vmax.f32 %v4059_v19, 0.0 }
 0x267   :  { %v4137_v46 = vmax.f32 %v4057_v51, 0.0  ;;  %v5584_v22 = vpop.f32.mrb[160].mxu1  ;;  %v5598_v5 = vpop.f32.mrb[152].mxu0 }
 0x268   :  { %v4185_v11 = vpack.c.bf16 %v4139_v39, %v4138_v56  ;;  %v3934_v58 = vmax.f32 %v6871_v10, %v5584_v22  ;;  %v3713_v55 = vpop.f32.mrb[161].mxu1  ;;  %4979 = vmatpush3.bf16.msra.mxu1 %v6850_v53  ;;  %v3781_v61 = vpop.f32.mrb[153].mxu0 }
 0x269   :  { %v4184_v28 = vpack.c.bf16 %v4137_v46, %v4136_v1  ;;  %v3932_v4 = vmax.f32 %v6874_v27, %v3713_v55  ;;  %v5585_v21 = vpop.f32.mrb[162].mxu1  ;;  %v5599_v49 = vpop.f32.mrb[154].mxu0  ;;  %5639 = vmatprep.subr.bf16.mxu1 %v5791_v12 }
 0x26a   :  { %v4062_v23 = vadd.f32 %v6742_v54, %v3934_v58  ;;  %v3935_v57 = vmax.f32 %v6876_v42, %v5585_v21  ;;  %v3716_v62 = vpop.f32.mrb[163].mxu1  ;;  %v3784_v17 = vpop.f32.mrb[155].mxu0 }
 0x26b   :  { %v4060_v8 = vadd.f32 %v6734_v34, %v3932_v4  ;;  %v3933_v10 = vmax.f32 %v6879_v0, %v3716_v62  ;;  %4310 = vmatmul.mubr.bf16.vlgmr.msra.gmra.mrb[172].mxu1 %v5759_v25  ;;  %5613 = vmatpush3.bf16.msra.mxu0 %v4184_v28 }
 0x26c   :  { %v4063_v53 = vadd.f32 %v6752_v13, %v3935_v57  ;;  %5614 = vmatprep.subr.bf16.mxu0 %v5788_v2  ;;  %5636 = vmatprep.mubr.msk.f32.mxu1 %vm5789_vm2, %v5788_v2  ;;  %v4142_v27 = vmax.f32 %v4062_v23, 0.0  ;;  %v4208_v23 = vpop.permute.xlu0 %4207 }
 0x26d   :  { %v4061_v12 = vadd.f32 %v6739_v50, %v3933_v10  ;;  %v4140_v42 = vmax.f32 %v4060_v8, 0.0 }
 0x26e   :  { %v4143_v31 = vmax.f32 %v4063_v53, 0.0 }
 0x26f   :  { %v4141_v40 = vmax.f32 %v4061_v12, 0.0  ;;  %v5606_v15 = vpop.f32.mrb[164].mxu1  ;;  %5615 = vmatpush3.bf16.msra.mxu0 %v4185_v11 }
 0x270   :  { %v4187_v35 = vpack.c.bf16 %v4143_v31, %v4142_v27  ;;  %v3938_v0 = vmax.f32 %v6885_v63, %v5606_v15  ;;  %v3833_v60 = vpop.f32.mrb[165].mxu1  ;;  %5616 = vmatprep.subr.bf16.mxu0 %v5788_v2 }
 0x271   :  { %v4186_v3 = vpack.c.bf16 %v4141_v40, %v4140_v42  ;;  %v3936_v20 = vmax.f32 %v3765_v36, %v3833_v60  ;;  %v5607_v44 = vpop.f32.mrb[166].mxu1  ;;  %v4368_v60 = vlaneseq }
 0x272   :  { %v4066_v45 = vadd.f32 %v6730_v32, %v3938_v0  ;;  %v3939_v33 = vmax.f32 %v5595_v47, %v5607_v44  ;;  %v3836_v14 = vpop.f32.mrb[167].mxu1  ;;  %v4361_v0 = vld [vmem:[%s6950_s7] sm:$0x1] }
 0x273   :  { %v4064_v18 = vadd.f32 %v6728_v7, %v3936_v20  ;;  %v3937_v48 = vmax.f32 %v3768_v24, %v3836_v14  ;;  %5617 = vmatpush3.bf16.msra.mxu0 %v4186_v3  ;;  %v4369_v3 = vshrl.u32 %v4368_v60, 7 }
 0x274   :  { %v4067_v59 = vadd.f32 %v6732_v16, %v3939_v33  ;;  %5618 = vmatprep.subr.bf16.mxu0 %v5788_v2  ;;  %v4146_v41 = vmax.f32 %v4066_v45, 0.0 }
 0x275   :  { %v4065_v63 = vadd.f32 %v6726_v30, %v3937_v48  ;;  %v4144_v26 = vmax.f32 %v4064_v18, 0.0  ;;  %v4370_v20 = vsub.s32 0, %v4369_v3 }
 0x276   :  { %v4147_v29 = vmax.f32 %v4067_v59, 0.0 }
 0x277   :  { %v4145_v37 = vmax.f32 %v4065_v63, 0.0  ;;  %v5610_v36 = vpop.f32.mrb[168].mxu1  ;;  %5619 = vmatpush3.bf16.msra.mxu0 %v4187_v35 }
 0x278   :  { %v4189_v43 = vpack.c.bf16 %v4147_v29, %v4146_v41  ;;  %v3942_v32 = vmax.f32 %v5598_v5, %v5610_v36  ;;  %v3849_v47 = vpop.f32.mrb[169].mxu1  ;;  %5620 = vmatprep.subr.bf16.mxu0 %v5788_v2 }
 0x279   :  { %v4188_v7 = vpack.c.bf16 %v4145_v37, %v4144_v26  ;;  %v3940_v38 = vmax.f32 %v3781_v61, %v3849_v47  ;;  %v5611_v6 = vpop.f32.mrb[170].mxu1  ;;  %v4203_v61 = vpop.permute.xlu1 %4202 }
 0x27a   :  { %v4070_v16 = vadd.f32 %v6742_v54, %v3942_v32  ;;  %v3943_v24 = vmax.f32 %v5599_v49, %v5611_v6  ;;  %v3852_v52 = vpop.f32.mrb[171].mxu1 }
 0x27b   :  { %v4068_v30 = vadd.f32 %v6734_v34, %v3940_v38  ;;  %v3941_v9 = vmax.f32 %v3784_v17, %v3852_v52  ;;  %5621 = vmatpush3.bf16.msra.mxu0 %v4188_v7  ;;  %v5762_v34 = vld [vmem:[%s6948_s5 + $0x10] ss:$20 sps:$4 sm:$0xff]  }
 0x27c   :  { %v4071_v19 = vadd.f32 %v6752_v13, %v3943_v24  ;;  %5622 = vmatprep.subr.bf16.mxu0 %v5788_v2  ;;  %v4150_v56 = vmax.f32 %v4070_v16, 0.0 }
 0x27d   :  { %v4069_v51 = vadd.f32 %v6739_v50, %v3941_v9  ;;  %v4148_v1 = vmax.f32 %v4068_v30, 0.0  ;;  %v4366_v44 = vpop.permute.xlu1 %4365 }
 0x27e   :  { %v4151_v39 = vmax.f32 %v4071_v19, 0.0  ;;  %v4371_v45 = vrot.slane %v4366_v44, %v4370_v20 }
 0x27f   :  { %v4149_v46 = vmax.f32 %v4069_v51, 0.0  ;;  %5623 = vmatpush3.bf16.msra.mxu0 %v4189_v43 }
 0x280   :  { %v4191_v22 = vpack.c.bf16 %v4151_v39, %v4150_v56  ;;  %5624 = vmatprep.subr.bf16.mxu0 %v5788_v2 }
 0x281   :  { %v4190_v54 = vpack.c.bf16 %v4149_v46, %v4148_v1 }
 0x283   :  { %5625 = vmatpush3.bf16.msra.mxu0 %v4190_v54 }
 0x284   :  { %5626 = vmatprep.subr.bf16.mxu0 %v5788_v2 }
 0x287   :  { %5627 = vmatpush3.bf16.msra.mxu0 %v4191_v22 }
 0x28a   :  { %5629 = vmatmul.mubr.bf16.vlgmr.msra.gmra.mrb[160].mxu0 %v5762_v34 }
 0x2fe   :  { %v4958_v13 = vpop.f32.mrb[156].mxu0 }
 0x2ff   :  { %v4959_v50 = vpop.f32.mrb[157].mxu0 }
 0x300   :  { %v4960_v25 = vadd.f32 %v4959_v50, %v4958_v13  ;;  %v4961_v5 = vpop.f32.mrb[158].mxu0 }
 0x301   :  { %v4962_v11 = vpop.f32.mrb[159].mxu0 }
 0x302   :  { %v4963_v58 = vadd.f32 %v4962_v11, %v4961_v5  ;;  %v4271_v4 = vadd.f32 %v4960_v25, %v4203_v61 }
 0x304   :  { %v4274_v57 = vadd.f32 %v4963_v58, %v4208_v23 }
 0x33e   :  { %v4980_v55 = vpop.f32.mrb[172].mxu1 }
 0x33f   :  { %v4981_v28 = vpop.f32.mrb[173].mxu1 }
 0x340   :  { %v4982_v21 = vadd.f32 %v4981_v28, %v4980_v55  ;;  %v4983_v49 = vpop.f32.mrb[174].mxu1 }
 0x341   :  { %v4984_v2 = vpop.f32.mrb[175].mxu1 }
 0x342   :  { %v4985_v62 = vadd.f32 %v4984_v2, %v4983_v49  ;;  %v4312_v17 = vadd.f32 %v4982_v21, %v4271_v4 }
 0x344   :  { %v4315_v8 = vadd.f32 %v4985_v62, %v4274_v57 }
 0x35d   :  { %v4352_v10 = vpop.f32.mrb[160].mxu0 }
 0x35e   :  { %v4353_v53 = vadd.f32 %v4352_v10, %v4312_v17  ;;  %v5630_v12 = vpop.f32.mrb[161].mxu0 }
 0x35f   :  { %v4355_v27 = vpop.f32.mrb[162].mxu0 }
 0x360   :  { %v4356_v31 = vadd.f32 %v4355_v27, %v4315_v8  ;;  %v5631_v42 = vpop.f32.mrb[163].mxu0  ;;  %v4359_v40 = vmax.f32 %v4353_v53, 0.0 }
 0x362   :  { %v4360_v15 = vmax.f32 %v4356_v31, 0.0 }
 0x364   :  { %v5640_v35 = vpack.c.bf16 %v4360_v15, %v4359_v40 }
 0x366   :  { %5641 = vmatpush3.bf16.msra.mxu1 %v5640_v35 }
 0x369   :  { %5637 = vmatmul.mubr.msk.f32.vlgmr.msra.gmra.mrb[176].mxu1 %vm4372_vm5, %v4361_v0 }
 0x43c   :  { %v4442_v33 = vpop.f32.mrb[176].mxu1 }
 0x43d   :  { %v4443_v14 = vadd.f32 %v4442_v33, %v4371_v45  ;;  %v5638_v18 = vpop.f32.mrb[177].mxu1 }
 0x43f   :  { %4446 = vst [vmem:[#allocation3] sm:$0x1] %v4443_v14 }
 0x440   :  { %5775 = shalt.err (!%p5772_p4)
}
 0x441   :  { %s5776_s16 = scalar_lea.hbm %s6952_s9, 16 }
 0x442   :  { %p5777_p5 = scmp.ne.s32.totalorder %s6952_s9, %s5776_s16  ;;  %p5780_p6 = scmp.lt.u32.totalorder %s5776_s16, %s6952_s9 }
 0x444   :  { %p5782_p7 = pnand %p5780_p6, %p5777_p5 }
 0x446   :  { %5785 = shalt.err (!%p5782_p7)
}
 0x447   :  { %4456 = dma.vmem_to_hbm [thread:$0]  %s4454_s13, 16, %s6952_s9, [#allocation4]  }
 0x448   :  { %5786 = dma.done.wait [#allocation4], 16  }
 0x449   :  { %5787 = vsyncadd [#allocation4], 4294967280 }
 0x44a   :  { %4460 = vsyncpa [#allocation4], 1 }

</bundles_post_ra>
